<compile_context>
chip_gen: v5e
topology: v5e:2x2
jax: 0.10.0
libtpu: 0.0.40
codegen_flags: <defaults>
</compile_context>

<pallas_src>
import functools
import math

import jax
import jax.numpy as jnp
from jax.experimental import pallas as pl
from jax.experimental.pallas import tpu as pltpu


# ----------------------------------------------------------------------------
# Layout helpers (static Python math)
# ----------------------------------------------------------------------------
def _round_up(a, m):
    return ((a + m - 1) // m) * m


def _batch_split(B, max_per_step=8):
    """Fold Bb images per grid step; keep >= 2 steps when B > 1 (v7x dual TC)."""
    if B <= 1:
        return 1, 1
    steps = max(2, -(-B // max_per_step))
    Bb = -(-B // steps)
    return steps, Bb


def _geometry(W, N, Bb):
    """Flat-lane layout: pixel (y, x) of image b sits at lane base + b*P + y*W + x.

    base >= W+1 (top halo for image 0) and 128-aligned; P >= N+W (bottom halo of
    image b doubles as the top halo of image b+1), a multiple of W (so the column
    index is lane % W) and of 128 (lane-aligned per-image stores)."""
    base = _round_up(W + 1, 128)
    lcm = W * 128 // math.gcd(W, 128)
    P = _round_up(N + W, lcm)
    Lbuf = _round_up(base + Bb * P + W + 2, 128)
    return base, P, Lbuf


# ----------------------------------------------------------------------------
# In-kernel helpers
# ----------------------------------------------------------------------------
def _column_masks(W, Ntot):
    """0/1 bf16 masks (1, Ntot) that kill taps crossing the left/right image edge."""
    pos = jax.lax.broadcasted_iota(jnp.int32, (1, Ntot), 1)
    if W & (W - 1) == 0:                                   # power-of-two width
        col = pos & (W - 1)
    else:                                                  # generic width
        col = jax.lax.rem(pos, jnp.full_like(pos, W))
    ml = jnp.where(col == 0, 0.0, 1.0).astype(jnp.bfloat16)
    mr = jnp.where(col == W - 1, 0.0, 1.0).astype(jnp.bfloat16)
    return ml, mr


def _zero_halo(buf_ref, *, base, P, N, Bb, Lbuf):
    """Zero only the non-image lane ranges (left pad, per-image gaps, tail)."""
    rows = buf_ref.shape[0]
    dt = buf_ref.dtype
    buf_ref[:, 0:base] = jnp.zeros((rows, base), dt)
    for b in range(Bb):
        g0 = base + b * P + N
        buf_ref[:, g0:g0 + (P - N)] = jnp.zeros((rows, P - N), dt)
    t0 = base + Bb * P
    buf_ref[:, t0:Lbuf] = jnp.zeros((rows, Lbuf - t0), dt)


def _conv3x3(buf_ref, w_ref, b_ref, ml, mr, *, cin, base, W, Ntot, relu):
    """3x3 'same' conv on the flat lane layout: 9 shifted-window bf16 matmuls
    accumulated in f32 (no im2col concat, no big patches intermediate).

    buf_ref: (cin, Lbuf) bf16, image data at lanes [base + b*P, base + b*P + N),
             zeros everywhere else.
    w_ref:   (cout, 9*cin) bf16, columns ordered (dy, dx, ci).
    b_ref:   (cout, 1) f32.
    """
    cout = w_ref.shape[0]
    acc = jnp.zeros((cout, Ntot), jnp.float32)
    for dy in range(3):
        for dx in range(3):
            s = base - W - 1 + dy * W + dx                 # static lane offset
            t = buf_ref[:, s:s + Ntot]                     # (cin, Ntot) bf16
            if dx == 0:
                t = t * ml                                  # left-edge halo
            elif dx == 2:
                t = t * mr                                  # right-edge halo
            k = dy * 3 + dx
            wk = w_ref[:, k * cin:(k + 1) * cin]            # (cout, cin) bf16
            acc = acc + jnp.dot(wk, t, preferred_element_type=jnp.float32)
    acc = acc + b_ref[...]                                  # bias in f32
    if relu:
        acc = jnp.maximum(acc, 0.0)
    return acc                                              # (cout, Ntot) f32


def _fused_kernel(x_ref, wb_ref, bb_ref, wh_ref, bh_ref, out_ref,
                  xbuf_ref, fbuf_ref, *, W, N, Bb, P, base, Lbuf, cin):
    """Fused backbone(Cin->16, ReLU) + merged heads(16->3) for Bb images."""
    Ntot = Bb * P
    ml, mr = _column_masks(W, Ntot)
    _zero_halo(xbuf_ref, base=base, P=P, N=N, Bb=Bb, Lbuf=Lbuf)
    _zero_halo(fbuf_ref, base=base, P=P, N=N, Bb=Bb, Lbuf=Lbuf)
    # Place the Bb input images (lane-aligned stores: base, P multiples of 128).
    for b in range(Bb):
        o = base + b * P
        xbuf_ref[:, o:o + N] = x_ref[b].astype(jnp.bfloat16)
    # Backbone stand-in: 3x3 conv -> 16 channels, bias + ReLU.
    feat = _conv3x3(xbuf_ref, wb_ref, bb_ref, ml, mr,
                    cin=cin, base=base, W=W, Ntot=Ntot, relu=True)
    # Feature map never leaves VMEM: copy only image columns (gaps stay zero).
    feat_bf = feat.astype(jnp.bfloat16)
    for b in range(Bb):
        o = base + b * P
        fbuf_ref[:, o:o + N] = feat_bf[:, b * P:b * P + N]
    # Merged heads: SegmentationHead(16,2) + RegressionHead(16,1) as one Cout=3 conv.
    heads = _conv3x3(fbuf_ref, wh_ref, bh_ref, ml, mr,
                     cin=16, base=base, W=W, Ntot=Ntot, relu=False)
    for b in range(Bb):
        out_ref[b] = heads[:, b * P:b * P + N]


def _backbone_kernel(x_ref, wb_ref, bb_ref, out_ref, xbuf_ref,
                     *, W, N, Bb, P, base, Lbuf, cin):
    """Backbone-only path (remove_head=True)."""
    Ntot = Bb * P
    ml, mr = _column_masks(W, Ntot)
    _zero_halo(xbuf_ref, base=base, P=P, N=N, Bb=Bb, Lbuf=Lbuf)
    for b in range(Bb):
        o = base + b * P
        xbuf_ref[:, o:o + N] = x_ref[b].astype(jnp.bfloat16)
    feat = _conv3x3(xbuf_ref, wb_ref, bb_ref, ml, mr,
                    cin=cin, base=base, W=W, Ntot=Ntot, relu=True)
    for b in range(Bb):
        out_ref[b] = feat[:, b * P:b * P + N]


# ----------------------------------------------------------------------------
# pallas_call wrappers
# ----------------------------------------------------------------------------
def _pack_conv_weight(w):
    """(3, 3, Cin, Cout) HWIO -> (Cout, 9*Cin) bf16, columns ordered (dy, dx, ci)."""
    kh, kw, cin, cout = w.shape
    return w.reshape(kh * kw * cin, cout).T.astype(jnp.bfloat16)


def _fused_heads_call(x_flat, wb2, bb2, wh2, bh2, *, W, steps, Bb):
    B_pad, Cin, N = x_flat.shape
    base, P, Lbuf = _geometry(W, N, Bb)
    kernel = functools.partial(_fused_kernel, W=W, N=N, Bb=Bb, P=P,
                               base=base, Lbuf=Lbuf, cin=Cin)
    flops = 2 * B_pad * N * 9 * (Cin * 16 + 16 * 3)
    bytes_accessed = (4 * (x_flat.size + B_pad * 3 * N + bb2.size + bh2.size)
                      + 2 * (wb2.size + wh2.size))
    return pl.pallas_call(
        kernel,
        out_shape=jax.ShapeDtypeStruct((B_pad, 3, N), jnp.float32),
        grid_spec=pltpu.PrefetchScalarGridSpec(
            num_scalar_prefetch=0,
            grid=(steps,),
            in_specs=[
                pl.BlockSpec((Bb, Cin, N), lambda i: (i, 0, 0)),
                pl.BlockSpec((16, 9 * Cin), lambda i: (0, 0)),
                pl.BlockSpec((16, 1), lambda i: (0, 0)),
                pl.BlockSpec((3, 9 * 16), lambda i: (0, 0)),
                pl.BlockSpec((3, 1), lambda i: (0, 0)),
            ],
            out_specs=pl.BlockSpec((Bb, 3, N), lambda i: (i, 0, 0)),
            scratch_shapes=[pltpu.VMEM((Cin, Lbuf), jnp.bfloat16),
                            pltpu.VMEM((16, Lbuf), jnp.bfloat16)],
        ),
        compiler_params=pltpu.CompilerParams(
            dimension_semantics=("parallel",)),
        cost_estimate=pl.CostEstimate(
            flops=flops, transcendentals=0, bytes_accessed=bytes_accessed),
    )(x_flat, wb2, bb2, wh2, bh2)


def _backbone_call(x_flat, wb2, bb2, *, W, steps, Bb):
    B_pad, Cin, N = x_flat.shape
    base, P, Lbuf = _geometry(W, N, Bb)
    kernel = functools.partial(_backbone_kernel, W=W, N=N, Bb=Bb, P=P,
                               base=base, Lbuf=Lbuf, cin=Cin)
    flops = 2 * B_pad * N * 9 * Cin * 16
    bytes_accessed = 4 * (x_flat.size + B_pad * 16 * N + bb2.size) + 2 * wb2.size
    return pl.pallas_call(
        kernel,
        out_shape=jax.ShapeDtypeStruct((B_pad, 16, N), jnp.float32),
        grid_spec=pltpu.PrefetchScalarGridSpec(
            num_scalar_prefetch=0,
            grid=(steps,),
            in_specs=[
                pl.BlockSpec((Bb, Cin, N), lambda i: (i, 0, 0)),
                pl.BlockSpec((16, 9 * Cin), lambda i: (0, 0)),
                pl.BlockSpec((16, 1), lambda i: (0, 0)),
            ],
            out_specs=pl.BlockSpec((Bb, 16, N), lambda i: (i, 0, 0)),
            scratch_shapes=[pltpu.VMEM((Cin, Lbuf), jnp.bfloat16)],
        ),
        compiler_params=pltpu.CompilerParams(
            dimension_semantics=("parallel",)),
        cost_estimate=pl.CostEstimate(
            flops=flops, transcendentals=0, bytes_accessed=bytes_accessed),
    )(x_flat, wb2, bb2)


# ----------------------------------------------------------------------------
# Public forward (NCHW in / NCHW out, like the PyTorch module)
# ----------------------------------------------------------------------------
def init_params(in_channels, key):
    """Deterministic synthetic parameters (shapes from the module __init__)."""
    ks = jax.random.split(key, 6)

    def conv_init(kw, kb, cin, cout):
        fan_in = cin * 9
        bound = 1.0 / (fan_in ** 0.5)
        w = jax.random.uniform(kw, (3, 3, cin, cout), jnp.float32, -bound, bound)
        b = jax.random.uniform(kb, (cout,), jnp.float32, -bound, bound)
        return w, b

    return {
        "backbone": conv_init(ks[0], ks[1], in_channels, 16),  # model -> 16 ch
        "seg": conv_init(ks[2], ks[3], 16, 2),                  # SegmentationHead(16, 2)
        "reg": conv_init(ks[4], ks[5], 16, 1),                  # RegressionHead(16, 1)
    }


def double_headed_forward(params, x_nchw, padding=0, remove_head=False):
    """Forward pass matching DoubleHeadedModel.forward."""
    x = x_nchw
    if padding > 0:                        # nn.ZeroPad2d((p, p, p, p))
        x = jnp.pad(x, ((0, 0), (0, 0), (padding, padding), (padding, padding)))
    B, Cin, H, W = x.shape
    N = H * W

    steps, Bb = _batch_split(B)
    B_pad = steps * Bb
    x_flat = x.reshape(B, Cin, N)          # channel-major, flat pixel axis
    if B_pad != B:
        x_flat = jnp.pad(x_flat, ((0, B_pad - B), (0, 0), (0, 0)))

    wb, bb = params["backbone"]
    wb2 = _pack_conv_weight(wb)
    bb2 = bb.reshape(16, 1).astype(jnp.float32)

    if remove_head:                        # return y = self.model(x)
        feat = _backbone_call(x_flat, wb2, bb2, W=W, steps=steps, Bb=Bb)
        return feat[:B].reshape(B, 16, H, W)

    ws, bs = params["seg"]
    wr, br = params["reg"]
    wh2 = _pack_conv_weight(jnp.concatenate([ws, wr], axis=-1))  # merged heads, Cout=3
    bh2 = jnp.concatenate([bs, br]).reshape(3, 1).astype(jnp.float32)

    out = _fused_heads_call(x_flat, wb2, bb2, wh2, bh2, W=W, steps=steps, Bb=Bb)
    out = out[:B].reshape(B, 3, H, W)
    y_seg = out[:, 0:2]
    y_reg = out[:, 2:3]
    if padding > 0:                        # crop the module-level padding
        y_seg = y_seg[:, :, padding:-padding, padding:-padding]
        y_reg = y_reg[:, :, padding:-padding, padding:-padding]
    return y_seg, y_reg


# ----------------------------------------------------------------------------
# Pure-JAX reference + self-test
# ----------------------------------------------------------------------------
def _conv3x3_ref(x, w, b, relu):
    out = jax.lax.conv_general_dilated(
        x, w, window_strides=(1, 1), padding="SAME",
        dimension_numbers=("NCHW", "HWIO", "NCHW"))
    out = out + b.reshape(1, -1, 1, 1)
    return jnp.maximum(out, 0.0) if relu else out


def _forward_ref(params, x, padding=0, remove_head=False):
    if padding > 0:
        x = jnp.pad(x, ((0, 0), (0, 0), (padding, padding), (padding, padding)))
    wb, bb = params["backbone"]
    y = _conv3x3_ref(x, wb, bb, True)
    if remove_head:
        return y
    ws, bs = params["seg"]
    wr, br = params["reg"]
    y_seg = _conv3x3_ref(y, ws, bs, False)
    y_reg = _conv3x3_ref(y, wr, br, False)
    if padding > 0:
        y_seg = y_seg[:, :, padding:-padding, padding:-padding]
        y_reg = y_reg[:, :, padding:-padding, padding:-padding]
    return y_seg, y_reg


if __name__ == "__main__":
    key = jax.random.PRNGKey(0)
    k_x, k_p = jax.random.split(key)

    B, C, H, W = 2, 4, 16, 16               # NCHW, like the PyTorch module
    x = jax.random.normal(k_x, (B, C, H, W), jnp.float32)
    params = init_params(C, k_p)

    # main path (padding=0, both heads)
    fwd = jax.jit(functools.partial(double_headed_forward, padding=0))
    y_seg, y_reg = fwd(params, x)
    jax.block_until_ready((y_seg, y_reg))
    assert y_seg.shape == (B, 2, H, W), y_seg.shape
    assert y_reg.shape == (B, 1, H, W), y_reg.shape
    r_seg, r_reg = _forward_ref(params, x, padding=0)
    assert jnp.allclose(y_seg, r_seg, atol=5e-2, rtol=5e-2), \
        float(jnp.max(jnp.abs(y_seg - r_seg)))
    assert jnp.allclose(y_reg, r_reg, atol=5e-2, rtol=5e-2), \
        float(jnp.max(jnp.abs(y_reg - r_reg)))

    # padding > 0 path (ZeroPad2d on input, crop on outputs)
    y_seg_p, y_reg_p = double_headed_forward(params, x, padding=8)
    r_seg_p, r_reg_p = _forward_ref(params, x, padding=8)
    assert y_seg_p.shape == (B, 2, H, W), y_seg_p.shape
    assert y_reg_p.shape == (B, 1, H, W), y_reg_p.shape
    assert jnp.allclose(y_seg_p, r_seg_p, atol=5e-2, rtol=5e-2), \
        float(jnp.max(jnp.abs(y_seg_p - r_seg_p)))
    assert jnp.allclose(y_reg_p, r_reg_p, atol=5e-2, rtol=5e-2), \
        float(jnp.max(jnp.abs(y_reg_p - r_reg_p)))

    # remove_head path (returns the backbone feature map)
    y_feat = double_headed_forward(params, x, remove_head=True)
    r_feat = _forward_ref(params, x, remove_head=True)
    assert y_feat.shape == (B, 16, H, W), y_feat.shape
    assert jnp.allclose(y_feat, r_feat, atol=5e-2, rtol=5e-2), \
        float(jnp.max(jnp.abs(y_feat - r_feat)))

    print("KERNEL_OK")
</pallas_src>

<mosaic_0001>
module attributes {stable_mosaic.version = 11 : i64} {
  func.func @_fused_kernel(%arg0: i32, %arg1: memref<1x4x256xf32, #tpu.memory_space<vmem>>, %arg2: memref<16x36xbf16, #tpu.memory_space<vmem>>, %arg3: memref<16x1xf32, #tpu.memory_space<vmem>>, %arg4: memref<3x144xbf16, #tpu.memory_space<vmem>>, %arg5: memref<3x1xf32, #tpu.memory_space<vmem>>, %arg6: memref<1x3x256xf32, #tpu.memory_space<vmem>>, %arg7: memref<4x640xbf16, #tpu.memory_space<vmem>>, %arg8: memref<16x640xbf16, #tpu.memory_space<vmem>>) attributes {dimension_semantics = [#tpu.dimension_semantics<parallel>], iteration_bounds = array<i64: 2>, scalar_prefetch = 0 : i64, scratch_operands = 2 : i64, tpu.core_type = #tpu.core_type<tc>, window_params = [{transform_indices = @transform_0, window_bounds = array<i64: 1, 4, 256>}, {pipeline_mode = #tpu.pipeline_mode<synchronous>, transform_indices = @transform_1, window_bounds = array<i64: 16, 36>}, {pipeline_mode = #tpu.pipeline_mode<synchronous>, transform_indices = @transform_2, window_bounds = array<i64: 16, 1>}, {pipeline_mode = #tpu.pipeline_mode<synchronous>, transform_indices = @transform_3, window_bounds = array<i64: 3, 144>}, {pipeline_mode = #tpu.pipeline_mode<synchronous>, transform_indices = @transform_4, window_bounds = array<i64: 3, 1>}, {transform_indices = @transform_5, window_bounds = array<i64: 1, 3, 256>}]} {
    %0 = tpu.iota {dimensions = array<i32: 1>} : vector<1x384xi32>
    %c15_i32 = arith.constant 15 : i32
    %1 = vector.broadcast %c15_i32 : i32 to vector<1x384xi32>
    %2 = arith.andi %0, %1 : vector<1x384xi32>
    %c0_i32 = arith.constant 0 : i32
    %3 = vector.broadcast %c0_i32 : i32 to vector<1x384xi32>
    %4 = arith.cmpi eq, %2, %3 : vector<1x384xi32>
    %cst = arith.constant 0.000000e+00 : f32
    %cst_0 = arith.constant 1.000000e+00 : f32
    %5 = vector.broadcast %cst : f32 to vector<1x384xf32>
    %6 = vector.broadcast %cst_0 : f32 to vector<1x384xf32>
    %7 = arith.select %4, %5, %6 : vector<1x384xi1>, vector<1x384xf32>
    %8 = arith.truncf %7 : vector<1x384xf32> to vector<1x384xbf16>
    %c15_i32_1 = arith.constant 15 : i32
    %9 = vector.broadcast %c15_i32_1 : i32 to vector<1x384xi32>
    %10 = arith.cmpi eq, %2, %9 : vector<1x384xi32>
    %cst_2 = arith.constant 0.000000e+00 : f32
    %cst_3 = arith.constant 1.000000e+00 : f32
    %11 = vector.broadcast %cst_2 : f32 to vector<1x384xf32>
    %12 = vector.broadcast %cst_3 : f32 to vector<1x384xf32>
    %13 = arith.select %10, %11, %12 : vector<1x384xi1>, vector<1x384xf32>
    %14 = arith.truncf %13 : vector<1x384xf32> to vector<1x384xbf16>
    %cst_4 = arith.constant 0.000000e+00 : bf16
    %15 = vector.broadcast %cst_4 : bf16 to vector<4x128xbf16>
    %c0 = arith.constant 0 : index
    %c0_5 = arith.constant 0 : index
    %16 = vector.load %arg7[%c0, %c0_5] : memref<4x640xbf16, #tpu.memory_space<vmem>>, vector<4x128xbf16>
    tpu.vector_store %arg7[%c0, %c0_5], %15 {strides = array<i32>} : memref<4x640xbf16, #tpu.memory_space<vmem>>, vector<4x128xbf16>,
    %cst_6 = arith.constant 0.000000e+00 : bf16
    %17 = vector.broadcast %cst_6 : bf16 to vector<4x128xbf16>
    %c0_7 = arith.constant 0 : index
    %c384 = arith.constant 384 : index
    %18 = vector.load %arg7[%c0_7, %c384] : memref<4x640xbf16, #tpu.memory_space<vmem>>, vector<4x128xbf16>
    tpu.vector_store %arg7[%c0_7, %c384], %17 {strides = array<i32>} : memref<4x640xbf16, #tpu.memory_space<vmem>>, vector<4x128xbf16>,
    %cst_8 = arith.constant 0.000000e+00 : bf16
    %19 = vector.broadcast %cst_8 : bf16 to vector<4x128xbf16>
    %c0_9 = arith.constant 0 : index
    %c512 = arith.constant 512 : index
    %20 = vector.load %arg7[%c0_9, %c512] : memref<4x640xbf16, #tpu.memory_space<vmem>>, vector<4x128xbf16>
    tpu.vector_store %arg7[%c0_9, %c512], %19 {strides = array<i32>} : memref<4x640xbf16, #tpu.memory_space<vmem>>, vector<4x128xbf16>,
    %cst_10 = arith.constant 0.000000e+00 : bf16
    %21 = vector.broadcast %cst_10 : bf16 to vector<16x128xbf16>
    %c0_11 = arith.constant 0 : index
    %c0_12 = arith.constant 0 : index
    %22 = vector.load %arg8[%c0_11, %c0_12] : memref<16x640xbf16, #tpu.memory_space<vmem>>, vector<16x128xbf16>
    tpu.vector_store %arg8[%c0_11, %c0_12], %21 {strides = array<i32>} : memref<16x640xbf16, #tpu.memory_space<vmem>>, vector<16x128xbf16>,
    %cst_13 = arith.constant 0.000000e+00 : bf16
    %23 = vector.broadcast %cst_13 : bf16 to vector<16x128xbf16>
    %c0_14 = arith.constant 0 : index
    %c384_15 = arith.constant 384 : index
    %24 = vector.load %arg8[%c0_14, %c384_15] : memref<16x640xbf16, #tpu.memory_space<vmem>>, vector<16x128xbf16>
    tpu.vector_store %arg8[%c0_14, %c384_15], %23 {strides = array<i32>} : memref<16x640xbf16, #tpu.memory_space<vmem>>, vector<16x128xbf16>,
    %cst_16 = arith.constant 0.000000e+00 : bf16
    %25 = vector.broadcast %cst_16 : bf16 to vector<16x128xbf16>
    %c0_17 = arith.constant 0 : index
    %c512_18 = arith.constant 512 : index
    %26 = vector.load %arg8[%c0_17, %c512_18] : memref<16x640xbf16, #tpu.memory_space<vmem>>, vector<16x128xbf16>
    tpu.vector_store %arg8[%c0_17, %c512_18], %25 {strides = array<i32>} : memref<16x640xbf16, #tpu.memory_space<vmem>>, vector<16x128xbf16>,
    %c0_19 = arith.constant 0 : index
    %c0_20 = arith.constant 0 : index
    %c0_21 = arith.constant 0 : index
    %27 = vector.load %arg1[%c0_19, %c0_20, %c0_21] : memref<1x4x256xf32, #tpu.memory_space<vmem>>, vector<1x4x256xf32>
    %28 = vector.shape_cast %27 : vector<1x4x256xf32> to vector<4x256xf32>
    %29 = arith.truncf %28 : vector<4x256xf32> to vector<4x256xbf16>
    %c0_22 = arith.constant 0 : index
    %c128 = arith.constant 128 : index
    %30 = vector.load %arg7[%c0_22, %c128] : memref<4x640xbf16, #tpu.memory_space<vmem>>, vector<4x256xbf16>
    tpu.vector_store %arg7[%c0_22, %c128], %29 {strides = array<i32>} : memref<4x640xbf16, #tpu.memory_space<vmem>>, vector<4x256xbf16>,
    %cst_23 = arith.constant 0.000000e+00 : f32
    %31 = vector.broadcast %cst_23 : f32 to vector<16x384xf32>
    %c0_24 = arith.constant 0 : index
    %c111 = arith.constant 111 : index
    %32 = vector.load %arg7[%c0_24, %c111] : memref<4x640xbf16, #tpu.memory_space<vmem>>, vector<4x384xbf16>
    %33 = vector.broadcast %8 : vector<1x384xbf16> to vector<4x384xbf16>
    %34 = arith.mulf %32, %33 : vector<4x384xbf16>
    %c0_25 = arith.constant 0 : index
    %c0_26 = arith.constant 0 : index
    %35 = vector.load %arg2[%c0_25, %c0_26] : memref<16x36xbf16, #tpu.memory_space<vmem>>, vector<16x4xbf16>
    %cst_27 = arith.constant dense<0.000000e+00> : vector<16x384xf32>
    %36 = tpu.matmul %35, %34, %cst_27 {dimension_numbers = #tpu.dot_dimension_numbers<[1], [0], [0], [1], [0, 0, 1, 1], [], []>} : vector<16x4xbf16>, vector<4x384xbf16>, vector<16x384xf32> -> vector<16x384xf32>
    %37 = arith.addf %31, %36 : vector<16x384xf32>
    %c0_28 = arith.constant 0 : index
    %c112 = arith.constant 112 : index
    %38 = vector.load %arg7[%c0_28, %c112] : memref<4x640xbf16, #tpu.memory_space<vmem>>, vector<4x384xbf16>
    %c0_29 = arith.constant 0 : index
    %c4 = arith.constant 4 : index
    %39 = vector.load %arg2[%c0_29, %c4] : memref<16x36xbf16, #tpu.memory_space<vmem>>, vector<16x4xbf16>
    %cst_30 = arith.constant dense<0.000000e+00> : vector<16x384xf32>
    %40 = tpu.matmul %39, %38, %cst_30 {dimension_numbers = #tpu.dot_dimension_numbers<[1], [0], [0], [1], [0, 0, 1, 1], [], []>} : vector<16x4xbf16>, vector<4x384xbf16>, vector<16x384xf32> -> vector<16x384xf32>
    %41 = arith.addf %37, %40 : vector<16x384xf32>
    %c0_31 = arith.constant 0 : index
    %c113 = arith.constant 113 : index
    %42 = vector.load %arg7[%c0_31, %c113] : memref<4x640xbf16, #tpu.memory_space<vmem>>, vector<4x384xbf16>
    %43 = vector.broadcast %14 : vector<1x384xbf16> to vector<4x384xbf16>
    %44 = arith.mulf %42, %43 : vector<4x384xbf16>
    %c0_32 = arith.constant 0 : index
    %c8 = arith.constant 8 : index
    %45 = vector.load %arg2[%c0_32, %c8] : memref<16x36xbf16, #tpu.memory_space<vmem>>, vector<16x4xbf16>
    %cst_33 = arith.constant dense<0.000000e+00> : vector<16x384xf32>
    %46 = tpu.matmul %45, %44, %cst_33 {dimension_numbers = #tpu.dot_dimension_numbers<[1], [0], [0], [1], [0, 0, 1, 1], [], []>} : vector<16x4xbf16>, vector<4x384xbf16>, vector<16x384xf32> -> vector<16x384xf32>
    %47 = arith.addf %41, %46 : vector<16x384xf32>
    %c0_34 = arith.constant 0 : index
    %c127 = arith.constant 127 : index
    %48 = vector.load %arg7[%c0_34, %c127] : memref<4x640xbf16, #tpu.memory_space<vmem>>, vector<4x384xbf16>
    %49 = vector.broadcast %8 : vector<1x384xbf16> to vector<4x384xbf16>
    %50 = arith.mulf %48, %49 : vector<4x384xbf16>
    %c0_35 = arith.constant 0 : index
    %c12 = arith.constant 12 : index
    %51 = vector.load %arg2[%c0_35, %c12] : memref<16x36xbf16, #tpu.memory_space<vmem>>, vector<16x4xbf16>
    %cst_36 = arith.constant dense<0.000000e+00> : vector<16x384xf32>
    %52 = tpu.matmul %51, %50, %cst_36 {dimension_numbers = #tpu.dot_dimension_numbers<[1], [0], [0], [1], [0, 0, 1, 1], [], []>} : vector<16x4xbf16>, vector<4x384xbf16>, vector<16x384xf32> -> vector<16x384xf32>
    %53 = arith.addf %47, %52 : vector<16x384xf32>
    %c0_37 = arith.constant 0 : index
    %c128_38 = arith.constant 128 : index
    %54 = vector.load %arg7[%c0_37, %c128_38] : memref<4x640xbf16, #tpu.memory_space<vmem>>, vector<4x384xbf16>
    %c0_39 = arith.constant 0 : index
    %c16 = arith.constant 16 : index
    %55 = vector.load %arg2[%c0_39, %c16] : memref<16x36xbf16, #tpu.memory_space<vmem>>, vector<16x4xbf16>
    %cst_40 = arith.constant dense<0.000000e+00> : vector<16x384xf32>
    %56 = tpu.matmul %55, %54, %cst_40 {dimension_numbers = #tpu.dot_dimension_numbers<[1], [0], [0], [1], [0, 0, 1, 1], [], []>} : vector<16x4xbf16>, vector<4x384xbf16>, vector<16x384xf32> -> vector<16x384xf32>
    %57 = arith.addf %53, %56 : vector<16x384xf32>
    %c0_41 = arith.constant 0 : index
    %c129 = arith.constant 129 : index
    %58 = vector.load %arg7[%c0_41, %c129] : memref<4x640xbf16, #tpu.memory_space<vmem>>, vector<4x384xbf16>
    %59 = vector.broadcast %14 : vector<1x384xbf16> to vector<4x384xbf16>
    %60 = arith.mulf %58, %59 : vector<4x384xbf16>
    %c0_42 = arith.constant 0 : index
    %c20 = arith.constant 20 : index
    %61 = vector.load %arg2[%c0_42, %c20] : memref<16x36xbf16, #tpu.memory_space<vmem>>, vector<16x4xbf16>
    %cst_43 = arith.constant dense<0.000000e+00> : vector<16x384xf32>
    %62 = tpu.matmul %61, %60, %cst_43 {dimension_numbers = #tpu.dot_dimension_numbers<[1], [0], [0], [1], [0, 0, 1, 1], [], []>} : vector<16x4xbf16>, vector<4x384xbf16>, vector<16x384xf32> -> vector<16x384xf32>
    %63 = arith.addf %57, %62 : vector<16x384xf32>
    %c0_44 = arith.constant 0 : index
    %c143 = arith.constant 143 : index
    %64 = vector.load %arg7[%c0_44, %c143] : memref<4x640xbf16, #tpu.memory_space<vmem>>, vector<4x384xbf16>
    %65 = vector.broadcast %8 : vector<1x384xbf16> to vector<4x384xbf16>
    %66 = arith.mulf %64, %65 : vector<4x384xbf16>
    %c0_45 = arith.constant 0 : index
    %c24 = arith.constant 24 : index
    %67 = vector.load %arg2[%c0_45, %c24] : memref<16x36xbf16, #tpu.memory_space<vmem>>, vector<16x4xbf16>
    %cst_46 = arith.constant dense<0.000000e+00> : vector<16x384xf32>
    %68 = tpu.matmul %67, %66, %cst_46 {dimension_numbers = #tpu.dot_dimension_numbers<[1], [0], [0], [1], [0, 0, 1, 1], [], []>} : vector<16x4xbf16>, vector<4x384xbf16>, vector<16x384xf32> -> vector<16x384xf32>
    %69 = arith.addf %63, %68 : vector<16x384xf32>
    %c0_47 = arith.constant 0 : index
    %c144 = arith.constant 144 : index
    %70 = vector.load %arg7[%c0_47, %c144] : memref<4x640xbf16, #tpu.memory_space<vmem>>, vector<4x384xbf16>
    %c0_48 = arith.constant 0 : index
    %c28 = arith.constant 28 : index
    %71 = vector.load %arg2[%c0_48, %c28] : memref<16x36xbf16, #tpu.memory_space<vmem>>, vector<16x4xbf16>
    %cst_49 = arith.constant dense<0.000000e+00> : vector<16x384xf32>
    %72 = tpu.matmul %71, %70, %cst_49 {dimension_numbers = #tpu.dot_dimension_numbers<[1], [0], [0], [1], [0, 0, 1, 1], [], []>} : vector<16x4xbf16>, vector<4x384xbf16>, vector<16x384xf32> -> vector<16x384xf32>
    %73 = arith.addf %69, %72 : vector<16x384xf32>
    %c0_50 = arith.constant 0 : index
    %c145 = arith.constant 145 : index
    %74 = vector.load %arg7[%c0_50, %c145] : memref<4x640xbf16, #tpu.memory_space<vmem>>, vector<4x384xbf16>
    %75 = vector.broadcast %14 : vector<1x384xbf16> to vector<4x384xbf16>
    %76 = arith.mulf %74, %75 : vector<4x384xbf16>
    %c0_51 = arith.constant 0 : index
    %c32 = arith.constant 32 : index
    %77 = vector.load %arg2[%c0_51, %c32] : memref<16x36xbf16, #tpu.memory_space<vmem>>, vector<16x4xbf16>
    %cst_52 = arith.constant dense<0.000000e+00> : vector<16x384xf32>
    %78 = tpu.matmul %77, %76, %cst_52 {dimension_numbers = #tpu.dot_dimension_numbers<[1], [0], [0], [1], [0, 0, 1, 1], [], []>} : vector<16x4xbf16>, vector<4x384xbf16>, vector<16x384xf32> -> vector<16x384xf32>
    %79 = arith.addf %73, %78 : vector<16x384xf32>
    %c0_53 = arith.constant 0 : index
    %c0_54 = arith.constant 0 : index
    %80 = vector.load %arg3[%c0_53, %c0_54] : memref<16x1xf32, #tpu.memory_space<vmem>>, vector<16x1xf32>
    %81 = vector.broadcast %80 : vector<16x1xf32> to vector<16x384xf32>
    %82 = arith.addf %79, %81 : vector<16x384xf32>
    %cst_55 = arith.constant 0.000000e+00 : f32
    %83 = vector.broadcast %cst_55 : f32 to vector<16x384xf32>
    %84 = arith.maximumf %82, %83 : vector<16x384xf32>
    %85 = arith.truncf %84 : vector<16x384xf32> to vector<16x384xbf16>
    %86 = vector.extract_strided_slice %85 {offsets = [0, 0], sizes = [16, 256], strides = [1, 1]} : vector<16x384xbf16> to vector<16x256xbf16>
    %c0_56 = arith.constant 0 : index
    %c128_57 = arith.constant 128 : index
    %87 = vector.load %arg8[%c0_56, %c128_57] : memref<16x640xbf16, #tpu.memory_space<vmem>>, vector<16x256xbf16>
    tpu.vector_store %arg8[%c0_56, %c128_57], %86 {strides = array<i32>} : memref<16x640xbf16, #tpu.memory_space<vmem>>, vector<16x256xbf16>,
    %cst_58 = arith.constant 0.000000e+00 : f32
    %88 = vector.broadcast %cst_58 : f32 to vector<3x384xf32>
    %c0_59 = arith.constant 0 : index
    %c111_60 = arith.constant 111 : index
    %89 = vector.load %arg8[%c0_59, %c111_60] : memref<16x640xbf16, #tpu.memory_space<vmem>>, vector<16x384xbf16>
    %90 = vector.broadcast %8 : vector<1x384xbf16> to vector<16x384xbf16>
    %91 = arith.mulf %89, %90 : vector<16x384xbf16>
    %c0_61 = arith.constant 0 : index
    %c0_62 = arith.constant 0 : index
    %92 = vector.load %arg4[%c0_61, %c0_62] : memref<3x144xbf16, #tpu.memory_space<vmem>>, vector<3x16xbf16>
    %cst_63 = arith.constant dense<0.000000e+00> : vector<3x384xf32>
    %93 = tpu.matmul %92, %91, %cst_63 {dimension_numbers = #tpu.dot_dimension_numbers<[1], [0], [0], [1], [0, 0, 1, 1], [], []>} : vector<3x16xbf16>, vector<16x384xbf16>, vector<3x384xf32> -> vector<3x384xf32>
    %94 = arith.addf %88, %93 : vector<3x384xf32>
    %c0_64 = arith.constant 0 : index
    %c112_65 = arith.constant 112 : index
    %95 = vector.load %arg8[%c0_64, %c112_65] : memref<16x640xbf16, #tpu.memory_space<vmem>>, vector<16x384xbf16>
    %c0_66 = arith.constant 0 : index
    %c16_67 = arith.constant 16 : index
    %96 = vector.load %arg4[%c0_66, %c16_67] : memref<3x144xbf16, #tpu.memory_space<vmem>>, vector<3x16xbf16>
    %cst_68 = arith.constant dense<0.000000e+00> : vector<3x384xf32>
    %97 = tpu.matmul %96, %95, %cst_68 {dimension_numbers = #tpu.dot_dimension_numbers<[1], [0], [0], [1], [0, 0, 1, 1], [], []>} : vector<3x16xbf16>, vector<16x384xbf16>, vector<3x384xf32> -> vector<3x384xf32>
    %98 = arith.addf %94, %97 : vector<3x384xf32>
    %c0_69 = arith.constant 0 : index
    %c113_70 = arith.constant 113 : index
    %99 = vector.load %arg8[%c0_69, %c113_70] : memref<16x640xbf16, #tpu.memory_space<vmem>>, vector<16x384xbf16>
    %100 = vector.broadcast %14 : vector<1x384xbf16> to vector<16x384xbf16>
    %101 = arith.mulf %99, %100 : vector<16x384xbf16>
    %c0_71 = arith.constant 0 : index
    %c32_72 = arith.constant 32 : index
    %102 = vector.load %arg4[%c0_71, %c32_72] : memref<3x144xbf16, #tpu.memory_space<vmem>>, vector<3x16xbf16>
    %cst_73 = arith.constant dense<0.000000e+00> : vector<3x384xf32>
    %103 = tpu.matmul %102, %101, %cst_73 {dimension_numbers = #tpu.dot_dimension_numbers<[1], [0], [0], [1], [0, 0, 1, 1], [], []>} : vector<3x16xbf16>, vector<16x384xbf16>, vector<3x384xf32> -> vector<3x384xf32>
    %104 = arith.addf %98, %103 : vector<3x384xf32>
    %c0_74 = arith.constant 0 : index
    %c127_75 = arith.constant 127 : index
    %105 = vector.load %arg8[%c0_74, %c127_75] : memref<16x640xbf16, #tpu.memory_space<vmem>>, vector<16x384xbf16>
    %106 = vector.broadcast %8 : vector<1x384xbf16> to vector<16x384xbf16>
    %107 = arith.mulf %105, %106 : vector<16x384xbf16>
    %c0_76 = arith.constant 0 : index
    %c48 = arith.constant 48 : index
    %108 = vector.load %arg4[%c0_76, %c48] : memref<3x144xbf16, #tpu.memory_space<vmem>>, vector<3x16xbf16>
    %cst_77 = arith.constant dense<0.000000e+00> : vector<3x384xf32>
    %109 = tpu.matmul %108, %107, %cst_77 {dimension_numbers = #tpu.dot_dimension_numbers<[1], [0], [0], [1], [0, 0, 1, 1], [], []>} : vector<3x16xbf16>, vector<16x384xbf16>, vector<3x384xf32> -> vector<3x384xf32>
    %110 = arith.addf %104, %109 : vector<3x384xf32>
    %c0_78 = arith.constant 0 : index
    %c128_79 = arith.constant 128 : index
    %111 = vector.load %arg8[%c0_78, %c128_79] : memref<16x640xbf16, #tpu.memory_space<vmem>>, vector<16x384xbf16>
    %c0_80 = arith.constant 0 : index
    %c64 = arith.constant 64 : index
    %112 = vector.load %arg4[%c0_80, %c64] : memref<3x144xbf16, #tpu.memory_space<vmem>>, vector<3x16xbf16>
    %cst_81 = arith.constant dense<0.000000e+00> : vector<3x384xf32>
    %113 = tpu.matmul %112, %111, %cst_81 {dimension_numbers = #tpu.dot_dimension_numbers<[1], [0], [0], [1], [0, 0, 1, 1], [], []>} : vector<3x16xbf16>, vector<16x384xbf16>, vector<3x384xf32> -> vector<3x384xf32>
    %114 = arith.addf %110, %113 : vector<3x384xf32>
    %c0_82 = arith.constant 0 : index
    %c129_83 = arith.constant 129 : index
    %115 = vector.load %arg8[%c0_82, %c129_83] : memref<16x640xbf16, #tpu.memory_space<vmem>>, vector<16x384xbf16>
    %116 = vector.broadcast %14 : vector<1x384xbf16> to vector<16x384xbf16>
    %117 = arith.mulf %115, %116 : vector<16x384xbf16>
    %c0_84 = arith.constant 0 : index
    %c80 = arith.constant 80 : index
    %118 = vector.load %arg4[%c0_84, %c80] : memref<3x144xbf16, #tpu.memory_space<vmem>>, vector<3x16xbf16>
    %cst_85 = arith.constant dense<0.000000e+00> : vector<3x384xf32>
    %119 = tpu.matmul %118, %117, %cst_85 {dimension_numbers = #tpu.dot_dimension_numbers<[1], [0], [0], [1], [0, 0, 1, 1], [], []>} : vector<3x16xbf16>, vector<16x384xbf16>, vector<3x384xf32> -> vector<3x384xf32>
    %120 = arith.addf %114, %119 : vector<3x384xf32>
    %c0_86 = arith.constant 0 : index
    %c143_87 = arith.constant 143 : index
    %121 = vector.load %arg8[%c0_86, %c143_87] : memref<16x640xbf16, #tpu.memory_space<vmem>>, vector<16x384xbf16>
    %122 = vector.broadcast %8 : vector<1x384xbf16> to vector<16x384xbf16>
    %123 = arith.mulf %121, %122 : vector<16x384xbf16>
    %c0_88 = arith.constant 0 : index
    %c96 = arith.constant 96 : index
    %124 = vector.load %arg4[%c0_88, %c96] : memref<3x144xbf16, #tpu.memory_space<vmem>>, vector<3x16xbf16>
    %cst_89 = arith.constant dense<0.000000e+00> : vector<3x384xf32>
    %125 = tpu.matmul %124, %123, %cst_89 {dimension_numbers = #tpu.dot_dimension_numbers<[1], [0], [0], [1], [0, 0, 1, 1], [], []>} : vector<3x16xbf16>, vector<16x384xbf16>, vector<3x384xf32> -> vector<3x384xf32>
    %126 = arith.addf %120, %125 : vector<3x384xf32>
    %c0_90 = arith.constant 0 : index
    %c144_91 = arith.constant 144 : index
    %127 = vector.load %arg8[%c0_90, %c144_91] : memref<16x640xbf16, #tpu.memory_space<vmem>>, vector<16x384xbf16>
    %c0_92 = arith.constant 0 : index
    %c112_93 = arith.constant 112 : index
    %128 = vector.load %arg4[%c0_92, %c112_93] : memref<3x144xbf16, #tpu.memory_space<vmem>>, vector<3x16xbf16>
    %cst_94 = arith.constant dense<0.000000e+00> : vector<3x384xf32>
    %129 = tpu.matmul %128, %127, %cst_94 {dimension_numbers = #tpu.dot_dimension_numbers<[1], [0], [0], [1], [0, 0, 1, 1], [], []>} : vector<3x16xbf16>, vector<16x384xbf16>, vector<3x384xf32> -> vector<3x384xf32>
    %130 = arith.addf %126, %129 : vector<3x384xf32>
    %c0_95 = arith.constant 0 : index
    %c145_96 = arith.constant 145 : index
    %131 = vector.load %arg8[%c0_95, %c145_96] : memref<16x640xbf16, #tpu.memory_space<vmem>>, vector<16x384xbf16>
    %132 = vector.broadcast %14 : vector<1x384xbf16> to vector<16x384xbf16>
    %133 = arith.mulf %131, %132 : vector<16x384xbf16>
    %c0_97 = arith.constant 0 : index
    %c128_98 = arith.constant 128 : index
    %134 = vector.load %arg4[%c0_97, %c128_98] : memref<3x144xbf16, #tpu.memory_space<vmem>>, vector<3x16xbf16>
    %cst_99 = arith.constant dense<0.000000e+00> : vector<3x384xf32>
    %135 = tpu.matmul %134, %133, %cst_99 {dimension_numbers = #tpu.dot_dimension_numbers<[1], [0], [0], [1], [0, 0, 1, 1], [], []>} : vector<3x16xbf16>, vector<16x384xbf16>, vector<3x384xf32> -> vector<3x384xf32>
    %136 = arith.addf %130, %135 : vector<3x384xf32>
    %c0_100 = arith.constant 0 : index
    %c0_101 = arith.constant 0 : index
    %137 = vector.load %arg5[%c0_100, %c0_101] : memref<3x1xf32, #tpu.memory_space<vmem>>, vector<3x1xf32>
    %138 = vector.broadcast %137 : vector<3x1xf32> to vector<3x384xf32>
    %139 = arith.addf %136, %138 : vector<3x384xf32>
    %140 = vector.extract_strided_slice %139 {offsets = [0, 0], sizes = [3, 256], strides = [1, 1]} : vector<3x384xf32> to vector<3x256xf32>
    %c0_102 = arith.constant 0 : index
    %c0_103 = arith.constant 0 : index
    %c0_104 = arith.constant 0 : index
    %141 = vector.load %arg6[%c0_102, %c0_103, %c0_104] : memref<1x3x256xf32, #tpu.memory_space<vmem>>, vector<1x3x256xf32>
    %142 = vector.shape_cast %141 : vector<1x3x256xf32> to vector<3x256xf32>
    %143 = vector.shape_cast %140 : vector<3x256xf32> to vector<1x3x256xf32>
    tpu.vector_store %arg6[%c0_102, %c0_103, %c0_104], %143 {strides = array<i32>} : memref<1x3x256xf32, #tpu.memory_space<vmem>>, vector<1x3x256xf32>,
    return
  }
  func.func @transform_0(%arg0: i32) -> (i32, i32, i32) {
    %c0_i32 = arith.constant 0 : i32
    %c0_i32_0 = arith.constant 0 : i32
    %c0_i32_1 = arith.constant 0 : i32
    return %arg0, %c0_i32, %c0_i32_0 : i32, i32, i32
  }
  func.func @transform_1(%arg0: i32) -> (i32, i32) {
    %c0_i32 = arith.constant 0 : i32
    %c0_i32_0 = arith.constant 0 : i32
    %c0_i32_1 = arith.constant 0 : i32
    return %c0_i32, %c0_i32_0 : i32, i32
  }
  func.func @transform_2(%arg0: i32) -> (i32, i32) {
    %c0_i32 = arith.constant 0 : i32
    %c0_i32_0 = arith.constant 0 : i32
    %c0_i32_1 = arith.constant 0 : i32
    return %c0_i32, %c0_i32_0 : i32, i32
  }
  func.func @transform_3(%arg0: i32) -> (i32, i32) {
    %c0_i32 = arith.constant 0 : i32
    %c0_i32_0 = arith.constant 0 : i32
    %c0_i32_1 = arith.constant 0 : i32
    return %c0_i32, %c0_i32_0 : i32, i32
  }
  func.func @transform_4(%arg0: i32) -> (i32, i32) {
    %c0_i32 = arith.constant 0 : i32
    %c0_i32_0 = arith.constant 0 : i32
    %c0_i32_1 = arith.constant 0 : i32
    return %c0_i32, %c0_i32_0 : i32, i32
  }
  func.func @transform_5(%arg0: i32) -> (i32, i32, i32) {
    %c0_i32 = arith.constant 0 : i32
    %c0_i32_0 = arith.constant 0 : i32
    %c0_i32_1 = arith.constant 0 : i32
    return %arg0, %c0_i32, %c0_i32_0 : i32, i32, i32
  }
}

</mosaic_0001>

<bundles_post_ra>
// kernel: double_headed_forward.1
= control target key start
LH: loop header
LB: loop body
LE: loop exit
PB: predicated region body
PF: predicated region fallthrough
CT: control target
= control target key end

     0   :  { %s2003_s18 = smov 0   ;;  %s2395_s0 = inlined_call_operand.vmem [shape: f32[2,4,256], index: 0, kind: input, shape index: {}]   ;;  %s2396_s1 = inlined_call_operand.vmem [shape: bf16[16,36], index: 1, kind: input, shape index: {}]   ;;  %s2397_s2 = inlined_call_operand.vmem [shape: f32[16,1], index: 2, kind: input, shape index: {}]   ;;  %s2398_s3 = inlined_call_operand.vmem [shape: bf16[3,144], index: 3, kind: input, shape index: {}]   ;;  %s2399_s4 = inlined_call_operand.vmem [shape: f32[3,1], index: 4, kind: input, shape index: {}]   ;;  %s2400_s5 = inlined_call_operand.vmem [shape: f32[2,3,256], index: 5, kind: output, shape index: {}]  }
   0x1 LB: > { %s1734_s19 = sadd.s32 4294967295, %s1950_s18   ;;  %p1738_p0 = scmp.ge.s32.totalorder %s1950_s18, 1  ;;  %s1950_s18 = sphi %s2003_s18, %s15_s18  }
   0x2   : > { %p187_p1 = scmp.lt.s32.totalorder %s1950_s18, 3 }
   0x4   : > { %p188_p2 = pnand %p1738_p0, %p187_p1 }
   0x5   : > { %s1953_s22 = smov (!%p188_p2), 124   ;;  %s1955_s23 = smov (!%p188_p2), 111  }
   0x6   : > { %191 = sbr.rel (%p188_p2) target bundleno = 833 (0x341), region = 40  ;;  %s1956_s24 = smov (!%p188_p2), 127  }
   0x7   : > { %s1957_s25 = smov (!%p188_p2), 15   ;;  %s1958_s26 = smov (!%p188_p2), 113  }
   0x8   : > { %s1959_s27 = smov (!%p188_p2), 1   ;;  %s1960_s28 = smov (!%p188_p2), 17  }
   0x9   : > { %p215_p3 = scmp.lt.s32.totalorder (!%p188_p2), %s1734_s19, 1  ;;  %s1961_s8 = smov (!%p188_p2), 16  }
   0xa   : > { %s1962_s13 = smov (!%p188_p2), 120   ;;  %s1963_s14 = smov (!%p188_p2), 112  }
   0xb   : > { %v226_v0 = vlaneseq  ;;  %v2014_v1 = vld [vmem:[%s2396_s1] sm:$0xff]  ;;  %v1952_v2 = vmov 0   ;;  %v1954_v9 = vmov 1.0   ;;  %vm284_vm4 = vcmask 1043456   ;;  %s2402_s19 = smov (!%p215_p3, %s1734_s19), 1  ;;  %s1964_s15 = smov 116  }
   0xc   : > { %249 = vst [vmem:[#allocation2] sm:$0x3] %v1952_v2  ;;  %1913 = vset.pattern.permute.xlu0 %v1952_v2  ;;  %1912 = vset.pattern.permute.xlu2 %v1952_v2  ;;  %s1837_s29 = sshll.u32 %s2402_s19, 3  ;;  %vm268_vm7 = vcmask 1041408   ;;  %vm292_vm8 = vcmask 908288   ;;  %vm445_vm9 = vcmask 924672  }
   0xd   : > { %v227_v3 = vand.u32 127, %v226_v0  ;;  %250 = vst [vmem:[#allocation2 + $0x6] sm:$0x3] %v1952_v2  ;;  %322 = vrot.lane.b32.xlu2 %v2014_v1, %s1953_s22  ;;  %s219_s7 = scalar_lea.vmem %s2395_s0, %s1837_s29  ;;  %vm538_vm10 = vcmask 1039360   ;;  %vm578_vm11 = vcmask 7168   ;;  %vm485_vm12 = vcmask 121856   ;;  %s224_s20 = scalar_lea.vmem %s2400_s5, %s1837_s29 }
   0xe   : > { %251 = vst [vmem:[#allocation2 + $0x8] sm:$0x3] %v1952_v2  ;;  %v258_v22 = vld [vmem:[%s219_s7] sm:$0xff]  ;;  %s1965_s22 = smov 108   ;;  %s1966_s30 = smov 100   ;;  %vm388_vm13 = vcmask 138240  }
   0xf   : > { %v228_v4 = vadd.s32 128, %v227_v3  ;;  %v229_v5 = vadd.s32 256, %v227_v3  ;;  %v230_v6 = vand.u32 15, %v227_v3  ;;  %252 = vst [vmem:[#allocation3] sm:$0xf] %v1952_v2  ;;  %s1967_s6 = smov 104  }
  0x10   : > { %253 = vst [vmem:[#allocation3 + $0x14] sm:$0xf] %v1952_v2  ;;  %vm341_vm14 = vcmask 31744   ;;  %vm338_vm15 = vcmask 130048   ;;  %s1969_s16 = smov 80  }
  0x11   : > { %v231_v7 = vand.u32 15, %v228_v4  ;;  %v232_v8 = vand.u32 15, %v229_v5  ;;  %vm233_vm0 = vcmp.eq.s32.totalorder %v230_v6, 0  ;;  %254 = vst [vmem:[#allocation3 + $0xc] sm:$0xf] %v1952_v2  ;;  %vm241_vm5 = vcmp.eq.s32.totalorder %v230_v6, 15 }
  0x12   : > { %255 = vst [vmem:[#allocation3 + $0x20] sm:$0xf] %v1952_v2  ;;  %v2017_v10 = vsel %vm233_vm0, 0.0, %v1954_v9  ;;  %v2027_v18 = vsel %vm241_vm5, 0.0, %v1954_v9  ;;  %vm871_vm0 = vcmask 916480  }
  0x13   : > { %vm234_vm1 = vcmp.eq.s32.totalorder %v231_v7, 0  ;;  %vm235_vm2 = vcmp.eq.s32.totalorder %v232_v8, 0  ;;  %vm242_vm3 = vcmp.eq.s32.totalorder %v231_v7, 15  ;;  %vm243_vm6 = vcmp.eq.s32.totalorder %v232_v8, 15  ;;  %260 = vst [vmem:[#allocation1] ss:$2 sm:$0xff] %v258_v22 }
  0x14   : > { %v2019_v11 = vsel %vm234_vm1, 0.0, %v1954_v9  ;;  %v2021_v12 = vsel %vm242_vm3, 0.0, %v1954_v9  ;;  %v238_v13 = vsel %vm235_vm2, 0.0, %v1954_v9  ;;  %v246_v19 = vsel %vm243_vm6, 0.0, %v1954_v9 }
  0x15   : > { %v283_v14 = vrot.slane %v2019_v11, 4  ;;  %v437_v16 = vrot.slane %v2021_v12, 4 }
  0x17   : > { %v285_v15 = vsel %vm284_vm4, %v2017_v10, %v283_v14  ;;  %v438_v20 = vsel %vm284_vm4, %v2027_v18, %v437_v16  ;;  %v1840_v16 = vld [vmem:[%s2396_s1] sm:$0xff] }
  0x18   : > { %v1882_v17 = vpack.i.bf16 %v238_v13, %v285_v15  ;;  %v1887_v21 = vpack.i.bf16 %v246_v19, %v438_v20 }
  0x1a   : > { %1883 = vrot.lane.b32.xlu0 %v1882_v17, %s1955_s23  ;;  %1893 = vrot.lane.b32.xlu1 %v1882_v17, %s1956_s24  ;;  %v261_v23 = vld.sshfl [vmem:[#allocation1] sm:$0xff pattern:$0x75316420]  ;;  %v262_v24 = vld.sshfl [vmem:[#allocation1 + $0x8] sm:$0xff pattern:$0x75316420] }
  0x1b   : > { %1903 = vrot.lane.b32.xlu2 %v1882_v17, %s1957_s25  ;;  %v265_v25 = vpack.c.bf16 %v262_v24, %v261_v23  ;;  %v1841_v17 = vld [vmem:[%s2396_s1] sm:$0xff] }
  0x1d   : > { %v267_v26 = vrot.slane %v265_v25, 2 }
  0x1f   : > { %v271_v27 = vsel %vm268_vm7, %v265_v25, %v267_v26 }
  0x20   : > { %273 = vst [vmem:[#allocation2 + $0x2] sm:$0xf] %v271_v27 }
  0x22   : > { %1888 = vrot.lane.b32.xlu0 %v1887_v21, %s1958_s26  ;;  %1898 = vrot.lane.b32.xlu1 %v1887_v21, %s1959_s27 }
  0x27   : > { %v274_v28 = vld [vmem:[#allocation2] sm:$0xff] }
  0x28   : > { %v275_v32 = vunpack.c.l.bf16 %v274_v28  ;;  %v276_v34 = vunpack.c.h.bf16 %v274_v28  ;;  %v2088_v20 = vld [vmem:[#allocation2 + $0x2] sm:$0xff] }
  0x29   : > { %v2095_v27 = vunpack.c.h.bf16 %v2088_v20 }
  0x2a   : > { %1908 = vrot.lane.b32.xlu0 %v1887_v21, %s1960_s28 }
  0x67   : > { %v2070_v60 = vpop.permute.xlu2 %322 }
  0x75   : > { %v1904_v19 = vpop.permute.xlu2 %1903 }
  0x76   : > { %v2091_v25 = vunpack.i.h.bf16 %v1904_v19  ;;  %v1905_v26 = vunpack.i.l.bf16 %v1904_v19 }
  0x8c   : > { %v1884_v29 = vpop.permute.xlu0 %1883  ;;  %v1894_v46 = vpop.permute.xlu1 %1893 }
  0x8d   : > { %v2050_v30 = vunpack.i.h.bf16 %v1884_v29  ;;  %v1885_v31 = vunpack.i.l.bf16 %v1884_v29  ;;  %v2060_v49 = vunpack.i.h.bf16 %v1894_v46  ;;  %v1895_v54 = vunpack.i.l.bf16 %v1894_v46 }
  0x8e   : > { %v769_v29 = vrot.slane %v2091_v25, 4 }
  0x8f   : > { %v291_v33 = vrot.slane %v2050_v30, 4  ;;  %v290_v35 = vrot.slane %v1885_v31, 4  ;;  %v537_v58 = vrot.slane %v2060_v49, 4  ;;  %v536_v59 = vrot.slane %v1895_v54, 4 }
  0x91   : > { %v293_v36 = vsel %vm292_vm8, %v290_v35, %v1885_v31  ;;  %v294_v37 = vsel %vm284_vm4, %v290_v35, %v291_v33  ;;  %v540_v3 = vsel %vm284_vm4, %v536_v59, %v537_v58  ;;  %v539_v7 = vsel %vm538_vm10, %v536_v59, %v1895_v54 }
  0x92   : > { %v295_v38 = vsel %vm292_vm8, %v294_v37, %v2050_v30  ;;  %v298_v39 = vmul.f32 %v293_v36, %v275_v32  ;;  %v541_v8 = vsel %vm538_vm10, %v540_v3, %v2060_v49  ;;  %v544_v9 = vmul.f32 %v539_v7, %v275_v32 }
  0x93   : > { %v299_v40 = vmul.f32 %v295_v38, %v276_v34  ;;  %v545_v15 = vmul.f32 %v541_v8, %v276_v34  ;;  %v768_v31 = vrot.slane %v1905_v26, 4 }
  0x94   : > { %302 = vst [vmem:[#allocation1] ss:$2 sm:$0xff] %v298_v39  ;;  %v1889_v41 = vpop.permute.xlu0 %1888  ;;  %v1899_v63 = vpop.permute.xlu1 %1898 }
  0x95   : > { %304 = vst [vmem:[#allocation1 + $0x10] ss:$2 sm:$0xff] %v299_v40  ;;  %v2057_v42 = vunpack.i.h.bf16 %v1889_v41  ;;  %v1890_v43 = vunpack.i.l.bf16 %v1889_v41  ;;  %v2073_v5 = vunpack.i.h.bf16 %v1899_v63  ;;  %v1900_v6 = vunpack.i.l.bf16 %v1899_v63 }
  0x96   : > { %v772_v40 = vsel %vm284_vm4, %v768_v31, %v769_v29  ;;  %v669_v41 = vunpack.c.l.bf16 %v2088_v20  ;;  %v771_v54 = vsel %vm485_vm12, %v768_v31, %v1905_v26  ;;  %v2142_v26 = vld [vmem:[%s2398_s3] sm:$0x3] }
  0x97   : > { %v444_v44 = vrot.slane %v2057_v42, 4  ;;  %v443_v45 = vrot.slane %v1890_v43, 4  ;;  %v676_v13 = vrot.slane %v2073_v5, 4  ;;  %v675_v14 = vrot.slane %v1900_v6, 4  ;;  %v1189_v31 = vld [vmem:[%s2398_s3] sm:$0x3] }
  0x99   : > { %v447_v51 = vsel %vm284_vm4, %v443_v45, %v444_v44  ;;  %v446_v56 = vsel %vm445_vm9, %v443_v45, %v1890_v43  ;;  %v679_v24 = vsel %vm284_vm4, %v675_v14, %v676_v13  ;;  %v678_v43 = vsel %vm578_vm11, %v675_v14, %v1900_v6 }
  0x9a   : > { %v448_v57 = vsel %vm445_vm9, %v447_v51, %v2057_v42  ;;  %v451_v61 = vmul.f32 %v446_v56, %v275_v32  ;;  %v622_v32 = vld [vmem:[#allocation2 + $0x2] sm:$0x3f]  ;;  %v773_v44 = vsel %vm485_vm12, %v772_v40, %v2091_v25  ;;  %v683_v45 = vmul.f32 %v678_v43, %v669_v41  ;;  %v1842_v56 = vld [vmem:[%s2396_s1] sm:$0xff] }
  0x9b   : > { %v305_v47 = vld.sshfl [vmem:[#allocation1] sm:$0xff pattern:$0x75316420]  ;;  %v306_v48 = vld.sshfl [vmem:[#allocation1 + $0x8] sm:$0xff pattern:$0x75316420]  ;;  %v452_v62 = vmul.f32 %v448_v57, %v276_v34  ;;  %v777_v46 = vmul.f32 %v773_v44, %v2095_v27  ;;  %v1929_v43 = vpack.i.bf16 %v2019_v11, %v2017_v10 }
  0x9c   : > { %v307_v50 = vld.sshfl [vmem:[#allocation1 + $0x10] sm:$0xff pattern:$0x75316420]  ;;  %v312_v52 = vpack.c.bf16 %v306_v48, %v306_v48  ;;  %v311_v53 = vpack.c.bf16 %v305_v47, %v305_v47  ;;  %v1843_v57 = vld [vmem:[%s2396_s1] sm:$0xff]  ;;  %v1909_v58 = vpop.permute.xlu0 %1908 }
  0x9d   : > { %325 = vst [vmem:[#allocation1] ss:$4 sm:$0xff] %v274_v28  ;;  %v313_v55 = vpack.c.bf16 %v307_v50, %v307_v50  ;;  %v680_v28 = vsel %vm578_vm11, %v679_v24, %v2073_v5  ;;  %v2124_v59 = vunpack.i.h.bf16 %v1909_v58  ;;  %v1321_v44 = vld [vmem:[%s2398_s3] sm:$0x3] }
  0x9e   : > { %384 = vrot.lane.b32.xlu1 %v312_v52, %s1960_s28  ;;  %382 = vrot.lane.b32.xlu0 %v311_v53, %s1960_s28  ;;  %v684_v33 = vmul.f32 %v680_v28, %v2095_v27  ;;  %v1397_v10 = vld [vmem:[%s2398_s3] sm:$0x3] }
  0x9f   : > { %386 = vrot.lane.b32.xlu2 %v313_v55, %s1960_s28  ;;  %v776_v55 = vmul.f32 %v771_v54, %v669_v41  ;;  %v1531_v54 = vld [vmem:[%s2398_s3] sm:$0x3] }
  0xa4   : > { %v326_v0 = vld.sshfl [vmem:[#allocation1] sm:$0xff pattern:$0x73625140]  ;;  %v328_v2 = vld.sshfl [vmem:[#allocation1 + $0x8] sm:$0xff pattern:$0x73625140] }
  0xa5   : > { %v330_v4 = vld.sshfl [vmem:[#allocation1 + $0x10] sm:$0xff pattern:$0x73625140]  ;;  %455 = vst [vmem:[#allocation1] ss:$2 sm:$0xff] %v451_v61  ;;  %v1910_v61 = vunpack.i.l.bf16 %v1909_v58 }
  0xa6   : > { %457 = vst [vmem:[#allocation1 + $0x10] ss:$2 sm:$0xff] %v452_v62  ;;  %336 = vrot.lane.b32.xlu1 %v330_v4, %s1961_s8  ;;  %334 = vrot.lane.b32.xlu0 %v328_v2, %s1961_s8 }
  0xa7   : > { %332 = vrot.lane.b32.xlu2 %v326_v0, %s1961_s8  ;;  %v923_v0 = vrot.slane %v2124_v59, 4  ;;  %v922_v2 = vrot.slane %v1910_v61, 4 }
  0xa9   : > { %v926_v7 = vsel %vm284_vm4, %v922_v2, %v923_v0  ;;  %v925_v14 = vsel %vm388_vm13, %v922_v2, %v1910_v61 }
  0xac   : > { %v458_v21 = vld.sshfl [vmem:[#allocation1] sm:$0xff pattern:$0x75316420]  ;;  %v459_v22 = vld.sshfl [vmem:[#allocation1 + $0x8] sm:$0xff pattern:$0x75316420] }
  0xad   : > { %v460_v23 = vld.sshfl [vmem:[#allocation1 + $0x10] sm:$0xff pattern:$0x75316420]  ;;  %548 = vst [vmem:[#allocation1] ss:$2 sm:$0xff] %v544_v9  ;;  %v464_v36 = vpack.c.bf16 %v458_v21, %v458_v21  ;;  %v465_v39 = vpack.c.bf16 %v459_v22, %v459_v22 }
  0xae   : > { %550 = vst [vmem:[#allocation1 + $0x10] ss:$2 sm:$0xff] %v545_v15  ;;  %474 = vrot.lane.b32.xlu1 %v1840_v16, %s1962_s13  ;;  %623 = vrot.lane.b32.xlu0 %v1841_v17, %s1963_s14  ;;  %v466_v37 = vpack.c.bf16 %v460_v23, %v460_v23  ;;  %v927_v15 = vsel %vm388_vm13, %v926_v7, %v2124_v59 }
  0xaf   : > { %567 = vrot.lane.b32.xlu2 %v1841_v17, %s1964_s15  ;;  %v930_v16 = vmul.f32 %v925_v14, %v669_v41  ;;  %v931_v17 = vmul.f32 %v927_v15, %v2095_v27  ;;  %v1914_v41 = vpack.i.bf16 %v2021_v12, %v2027_v18  ;;  %v1476_v18 = vld [vmem:[%s2398_s3] sm:$0x3] }
  0xb4   : > { %v551_v34 = vld.sshfl [vmem:[#allocation1] sm:$0xff pattern:$0x75316420]  ;;  %v552_v35 = vld.sshfl [vmem:[#allocation1 + $0x8] sm:$0xff pattern:$0x75316420] }
  0xb5   : > { %v553_v38 = vld.sshfl [vmem:[#allocation1 + $0x10] sm:$0xff pattern:$0x75316420]  ;;  %v558_v48 = vpack.c.bf16 %v552_v35, %v552_v35  ;;  %v557_v52 = vpack.c.bf16 %v551_v34, %v551_v34 }
  0xb6   : > { %626 = vst [vmem:[#allocation1] ss:$4 sm:$0xff] %v622_v32  ;;  %479 = vrot.lane.b32.xlu1 %v464_v36, %s1957_s25  ;;  %483 = vrot.lane.b32.xlu0 %v466_v37, %s1957_s25  ;;  %v559_v47 = vpack.c.bf16 %v553_v38, %v553_v38  ;;  %v1844_v36 = vld [vmem:[%s2396_s1] sm:$0xff]  ;;  %v1009_v37 = vld [vmem:[%s2397_s2 + $0x8] sm:$0xff] }
  0xb7   : > { %689 = vst [vmem:[#allocation1 + $0x10] ss:$2 sm:$0xff] %v684_v33  ;;  %481 = vrot.lane.b32.xlu2 %v465_v39, %s1957_s25  ;;  %v1268_v38 = vld [vmem:[%s2398_s3] sm:$0x3] }
  0xb8   : > { %v1008_v39 = vld [vmem:[%s2397_s2] sm:$0xff] }
  0xbd   : > { %v2110_v50 = vld.sshfl [vmem:[#allocation1] sm:$0xff pattern:$0x73625140]  ;;  %v2112_v51 = vld.sshfl [vmem:[#allocation1 + $0x8] sm:$0xff pattern:$0x73625140] }
  0xbe   : > { %687 = vst [vmem:[#allocation1] ss:$2 sm:$0xff] %v683_v45  ;;  %v692_v53 = vld.sshfl [vmem:[#allocation1 + $0x10] sm:$0xff pattern:$0x75316420]  ;;  %576 = vrot.lane.b32.xlu1 %v559_v47, %s1959_s27  ;;  %574 = vrot.lane.b32.xlu0 %v558_v48, %s1959_s27 }
  0xbf   : > { %782 = vst [vmem:[#allocation1 + $0x10] ss:$2 sm:$0xff] %v777_v46  ;;  %572 = vrot.lane.b32.xlu2 %v557_v52, %s1959_s27  ;;  %v698_v6 = vpack.c.bf16 %v692_v53, %v692_v53  ;;  %v1787_v46 = vld [vmem:[#allocation3] sm:$0xf]  ;;  %v1846_v47 = vld [vmem:[#allocation3 + $0x10] sm:$0xf0] }
  0xc0   : > { %v1788_v48 = vor.u32 %v1846_v47, %v1787_v46 }
  0xc5   : > { %v690_v62 = vld.sshfl [vmem:[#allocation1] sm:$0xff pattern:$0x75316420]  ;;  %v691_v63 = vld.sshfl [vmem:[#allocation1 + $0x8] sm:$0xff pattern:$0x75316420] }
  0xc6   : > { %706 = vrot.lane.b32.xlu1 %v1842_v56, %s1965_s22  ;;  %855 = vrot.lane.b32.xlu0 %v1843_v57, %s1966_s30  ;;  %780 = vst [vmem:[#allocation1] ss:$2 sm:$0xff] %v776_v55  ;;  %v785_v3 = vld.sshfl [vmem:[#allocation1 + $0x10] sm:$0xff pattern:$0x75316420]  ;;  %v696_v4 = vpack.c.bf16 %v690_v62, %v690_v62  ;;  %v697_v8 = vpack.c.bf16 %v691_v63, %v691_v63  ;;  %s1968_s30 = smov 96  }
  0xc7   : > { %799 = vrot.lane.b32.xlu2 %v1843_v57, %s1967_s6  ;;  %v791_v19 = vpack.c.bf16 %v785_v3, %v785_v3 }
  0xcd   : > { %v784_v9 = vld.sshfl [vmem:[#allocation1 + $0x8] sm:$0xff pattern:$0x75316420]  ;;  %v783_v13 = vld.sshfl [vmem:[#allocation1] sm:$0xff pattern:$0x75316420] }
  0xce   : > { %711 = vrot.lane.b32.xlu1 %v696_v4, %s1956_s24  ;;  %715 = vrot.lane.b32.xlu0 %v698_v6, %s1956_s24  ;;  %858 = vst [vmem:[#allocation1] ss:$4 sm:$0xff] %v2088_v20  ;;  %v790_v21 = vpack.c.bf16 %v784_v9, %v784_v9  ;;  %v789_v22 = vpack.c.bf16 %v783_v13, %v783_v13 }
  0xcf   : > { %713 = vrot.lane.b32.xlu2 %v697_v8, %s1956_s24 }
  0xd5   : > { %v859_v23 = vld.sshfl [vmem:[#allocation1] sm:$0xff pattern:$0x73625140]  ;;  %v861_v24 = vld.sshfl [vmem:[#allocation1 + $0x8] sm:$0xff pattern:$0x73625140] }
  0xd6   : > { %808 = vrot.lane.b32.xlu1 %v791_v19, %s1958_s26  ;;  %806 = vrot.lane.b32.xlu0 %v790_v21, %s1958_s26  ;;  %v863_v20 = vld.sshfl [vmem:[#allocation1 + $0x10] sm:$0xff pattern:$0x73625140]  ;;  %934 = vst [vmem:[#allocation1] ss:$2 sm:$0xff] %v930_v16 }
  0xd7   : > { %804 = vrot.lane.b32.xlu2 %v789_v22, %s1958_s26  ;;  %936 = vst [vmem:[#allocation1 + $0x10] ss:$2 sm:$0xff] %v931_v17 }
  0xdd   : > { %v937_v27 = vld.sshfl [vmem:[#allocation1] sm:$0xff pattern:$0x75316420]  ;;  %v938_v28 = vld.sshfl [vmem:[#allocation1 + $0x8] sm:$0xff pattern:$0x75316420] }
  0xde   : > { %v939_v29 = vld.sshfl [vmem:[#allocation1 + $0x10] sm:$0xff pattern:$0x75316420]  ;;  %867 = vrot.lane.b32.xlu1 %v861_v24, %s1963_s14  ;;  %865 = vrot.lane.b32.xlu0 %v859_v23, %s1963_s14  ;;  %v943_v32 = vpack.c.bf16 %v937_v27, %v937_v27  ;;  %v944_v34 = vpack.c.bf16 %v938_v28, %v938_v28  ;;  %v632_v23 = vsel %vm268_vm7, %v2110_v50, 0 }
  0xdf   : > { %1062 = vst [vmem:[#allocation1] ss:$4 sm:$0xff] %v2142_v26  ;;  %869 = vrot.lane.b32.xlu2 %v863_v20, %s1963_s14  ;;  %v945_v33 = vpack.c.bf16 %v939_v29, %v939_v29 }
  0xe6   : > { %v1063_v35 = vld.sshfl [vmem:[#allocation1] sm:$0xff pattern:$0x73625140]  ;;  %958 = vrot.lane.b32.xlu1 %v943_v32, %s1955_s23  ;;  %962 = vrot.lane.b32.xlu0 %v945_v33, %s1955_s23 }
  0xe7   : > { %1191 = vst [vmem:[#allocation1] ss:$4 sm:$0xff] %v1189_v31  ;;  %960 = vrot.lane.b32.xlu2 %v944_v34, %s1955_s23 }
  0xee   : > { %v2166_v40 = vld.sshfl [vmem:[#allocation1] sm:$0xff pattern:$0x73625140]  ;;  %953 = vrot.lane.b32.xlu1 %v1844_v36, %s1968_s30  ;;  %1017 = vperm.xlu0 %1913, %v1009_v37  }
  0xef   : > { %1270 = vst [vmem:[#allocation1] ss:$4 sm:$0xff] %v1268_v38  ;;  %1012 = vperm.xlu2 %1912, %v1008_v39  }
  0xf6   : > { %v2176_v45 = vld.sshfl [vmem:[#allocation1] sm:$0xff pattern:$0x73625140]  ;;  %1915 = vrot.lane.b32.xlu1 %v1914_v41, %s1958_s26  ;;  %1930 = vrot.lane.b32.xlu0 %v1929_v43, %s1957_s25 }
  0xf7   : > { %1323 = vst [vmem:[#allocation1] ss:$4 sm:$0xff] %v1321_v44  ;;  %1920 = vrot.lane.b32.xlu2 %v1929_v43, %s1955_s23 }
  0xf9   : > { %v387_v11 = vpop.permute.xlu2 %386 }
  0xfe   : > { %v2184_v12 = vld.sshfl [vmem:[#allocation1] sm:$0xff pattern:$0x73625140]  ;;  %1925 = vrot.lane.b32.xlu1 %v1929_v43, %s1956_s24 }
  0xff   : > { %1399 = vst [vmem:[#allocation1] ss:$4 sm:$0xff] %v1397_v10  ;;  %1080 = vrot.lane.b32.xlu2 %v1788_v48, %s1961_s8 }
 0x101   : > { %v333_v53 = vpop.permute.xlu2 %332 }
 0x106   : > { %v2191_v52 = vld.sshfl [vmem:[#allocation1] sm:$0xff pattern:$0x73625140]  ;;  %1935 = vrot.lane.b32.xlu1 %v1914_v41, %s1959_s27 }
 0x107   : > { %1065 = vrot.lane.b32.xlu2 %v1063_v35, %s1963_s14  ;;  %1478 = vst [vmem:[#allocation1] ss:$4 sm:$0xff] %v1476_v18 }
 0x109   : > { %v568_v58 = vpop.permute.xlu2 %567 }
 0x10e   : > { %v2198_v55 = vld.sshfl [vmem:[#allocation1] sm:$0xff pattern:$0x73625140] }
 0x10f   : > { %1940 = vrot.lane.b32.xlu2 %v1914_v41, %s1960_s28  ;;  %1533 = vst [vmem:[#allocation1] ss:$4 sm:$0xff] %v1531_v54 }
 0x110   : > { %v385_v56 = vpop.permute.xlu1 %384  ;;  %v383_v57 = vpop.permute.xlu0 %382 }
 0x111   : > { %v389_v61 = vsel %vm388_vm13, %v383_v57, %v385_v56  ;;  %v390_v62 = vsel %vm388_vm13, %v385_v56, %v387_v11  ;;  %v482_v9 = vpop.permute.xlu2 %481 }
 0x112   : > { %v395_v63 = vsel %vm268_vm7, %v389_v61, 0  ;;  %v398_v0 = vsel %vm268_vm7, %v390_v62, 0 }
 0x113   : > { %407 = vmatpush.bf16.msra.mxu2 %v395_v63  ;;  %421 = vmatpush.bf16.msra.mxu3 %v398_v0 }
 0x116   : > { %1750 = vmatmul.msk.bf16.vlgmr.msra.gmra.mxu3 %vm341_vm14, %v2014_v1  ;;  %1749 = vmatmul.msk.bf16.vlgmr.msra.gmra.mxu2 %vm341_vm14, %v2014_v1 }
 0x118   : > { %v337_v2 = vpop.permute.xlu1 %336  ;;  %v335_v3 = vpop.permute.xlu0 %334 }
 0x119   : > { %v339_v4 = vsel %vm338_vm15, %v333_v53, %v335_v3  ;;  %v340_v6 = vsel %vm338_vm15, %v335_v3, %v337_v2  ;;  %v573_v14 = vpop.permute.xlu2 %572 }
 0x11a   : > { %v346_v7 = vsel %vm268_vm7, %v339_v4, 0  ;;  %v349_v8 = vsel %vm268_vm7, %v340_v6, 0 }
 0x11b   : > { %358 = vmatpush.bf16.msra.mxu0 %v346_v7  ;;  %372 = vmatpush.bf16.msra.mxu1 %v349_v8 }
 0x11e   : > { %1747 = vmatmul.msk.bf16.vlgmr.msra.gmra.mxu0 %vm341_vm14, %v2070_v60  ;;  %1748 = vmatmul.msk.bf16.vlgmr.msra.gmra.mxu1 %vm341_vm14, %v2070_v60  ;;  %v634_v60 = vsel %vm268_vm7, %v2112_v51, 0 }
 0x120   : > { %v475_v1 = vpop.permute.xlu1 %474  ;;  %v624_v13 = vpop.permute.xlu0 %623 }
 0x121   : > { %v800_v24 = vpop.permute.xlu2 %799 }
 0x128   : > { %v480_v15 = vpop.permute.xlu1 %479  ;;  %v484_v16 = vpop.permute.xlu0 %483 }
 0x129   : > { %v486_v17 = vsel %vm485_vm12, %v480_v15, %v482_v9  ;;  %v487_v19 = vsel %vm485_vm12, %v482_v9, %v484_v16  ;;  %v714_v33 = vpop.permute.xlu2 %713 }
 0x12a   : > { %v492_v21 = vsel %vm268_vm7, %v486_v17, 0  ;;  %v495_v22 = vsel %vm268_vm7, %v487_v19, 0 }
 0x12b   : > { %504 = vmatpush.bf16.msrb.mxu0 %v492_v21  ;;  %518 = vmatpush.bf16.msrb.mxu1 %v495_v22 }
 0x12e   : > { %1755 = vmatmul.msk.bf16.vlgmr.msrb.gmra.mxu0 %vm341_vm14, %v475_v1  ;;  %1756 = vmatmul.msk.bf16.vlgmr.msrb.gmra.mxu1 %vm341_vm14, %v475_v1 }
 0x12f   : > { %643 = vmatpush.bf16.msra.mxu0 %v632_v23  ;;  %657 = vmatpush.bf16.msra.mxu1 %v634_v60 }
 0x130   : > { %v577_v20 = vpop.permute.xlu1 %576  ;;  %v575_v27 = vpop.permute.xlu0 %574 }
 0x131   : > { %v579_v28 = vsel %vm578_vm11, %v573_v14, %v575_v27  ;;  %v580_v29 = vsel %vm578_vm11, %v575_v27, %v577_v20  ;;  %v805_v41 = vpop.permute.xlu2 %804 }
 0x132   : > { %v585_v31 = vsel %vm268_vm7, %v579_v28, 0  ;;  %v588_v50 = vsel %vm268_vm7, %v580_v29, 0 }
 0x133   : > { %597 = vmatpush.bf16.msrb.mxu2 %v585_v31  ;;  %611 = vmatpush.bf16.msrb.mxu3 %v588_v50 }
 0x136   : > { %1761 = vmatmul.msk.bf16.vlgmr.msrb.gmra.mxu2 %vm341_vm14, %v568_v58  ;;  %1762 = vmatmul.msk.bf16.vlgmr.msrb.gmra.mxu3 %vm341_vm14, %v568_v58 }
 0x138   : > { %v707_v51 = vpop.permute.xlu1 %706  ;;  %v856_v32 = vpop.permute.xlu0 %855 }
 0x139   : > { %v870_v11 = vpop.permute.xlu2 %869 }
 0x13e   : > { %1763 = vmatmul.msk.bf16.vlgmr.msra.gmra.mxu0 %vm341_vm14, %v624_v13  ;;  %1764 = vmatmul.msk.bf16.vlgmr.msra.gmra.mxu1 %vm341_vm14, %v624_v13 }
 0x140   : > { %v712_v34 = vpop.permute.xlu1 %711  ;;  %v716_v35 = vpop.permute.xlu0 %715 }
 0x141   : > { %v718_v36 = vsel %vm538_vm10, %v712_v34, %v714_v33  ;;  %v719_v37 = vsel %vm538_vm10, %v714_v33, %v716_v35  ;;  %v961_v61 = vpop.permute.xlu2 %960 }
 0x142   : > { %v724_v38 = vsel %vm268_vm7, %v718_v36, 0  ;;  %v727_v39 = vsel %vm268_vm7, %v719_v37, 0 }
 0x143   : > { %736 = vmatpush.bf16.msra.mxu2 %v724_v38  ;;  %750 = vmatpush.bf16.msra.mxu3 %v727_v39 }
 0x146   : > { %1769 = vmatmul.msk.bf16.vlgmr.msra.gmra.mxu2 %vm341_vm14, %v707_v51  ;;  %1770 = vmatmul.msk.bf16.vlgmr.msra.gmra.mxu3 %vm341_vm14, %v707_v51 }
 0x148   : > { %v809_v43 = vpop.permute.xlu1 %808  ;;  %v807_v44 = vpop.permute.xlu0 %806 }
 0x149   : > { %v811_v46 = vsel %vm445_vm9, %v805_v41, %v807_v44  ;;  %v812_v47 = vsel %vm445_vm9, %v807_v44, %v809_v43 }
 0x14a   : > { %v817_v48 = vsel %vm268_vm7, %v811_v46, 0  ;;  %v820_v10 = vsel %vm268_vm7, %v812_v47, 0 }
 0x14b   : > { %829 = vmatpush.bf16.msrb.mxu0 %v817_v48  ;;  %843 = vmatpush.bf16.msrb.mxu1 %v820_v10 }
 0x14e   : > { %1775 = vmatmul.msk.bf16.vlgmr.msrb.gmra.mxu0 %vm341_vm14, %v800_v24  ;;  %1776 = vmatmul.msk.bf16.vlgmr.msrb.gmra.mxu1 %vm341_vm14, %v800_v24 }
 0x150   : > { %v868_v18 = vpop.permute.xlu1 %867  ;;  %v866_v53 = vpop.permute.xlu0 %865 }
 0x151   : > { %v873_v54 = vsel %vm871_vm0, %v868_v18, %v870_v11  ;;  %v872_v56 = vsel %vm871_vm0, %v866_v53, %v868_v18 }
 0x152   : > { %v881_v57 = vsel %vm268_vm7, %v873_v54, 0  ;;  %v878_v58 = vsel %vm268_vm7, %v872_v56, 0 }
 0x153   : > { %890 = vmatpush.bf16.msrb.mxu2 %v878_v58  ;;  %904 = vmatpush.bf16.msrb.mxu3 %v881_v57 }
 0x156   : > { %1777 = vmatmul.msk.bf16.vlgmr.msrb.gmra.mxu2 %vm341_vm14, %v856_v32  ;;  %1778 = vmatmul.msk.bf16.vlgmr.msrb.gmra.mxu3 %vm341_vm14, %v856_v32 }
 0x158   : > { %v959_v62 = vpop.permute.xlu1 %958  ;;  %v963_v63 = vpop.permute.xlu0 %962 }
 0x159   : > { %v965_v0 = vsel %vm292_vm8, %v959_v62, %v961_v61  ;;  %v966_v2 = vsel %vm292_vm8, %v961_v61, %v963_v63 }
 0x15a   : > { %v971_v3 = vsel %vm268_vm7, %v965_v0, 0  ;;  %v974_v4 = vsel %vm268_vm7, %v966_v2, 0 }
 0x15b   : > { %983 = vmatpush.bf16.msra.mxu0 %v971_v3  ;;  %997 = vmatpush.bf16.msra.mxu1 %v974_v4 }
 0x160   : > { %v954_v6 = vpop.permute.xlu1 %953 }
 0x161   : > { %1783 = vmatmul.msk.bf16.vlgmr.msra.gmra.mxu0 %vm341_vm14, %v954_v6  ;;  %1784 = vmatmul.msk.bf16.vlgmr.msra.gmra.mxu1 %vm341_vm14, %v954_v6 }
 0x199   : > { %v409_v13 = vpop.f32.mrf.mxu2  ;;  %v423_v14 = vpop.f32.mrf.mxu3 }
 0x19b   : > { %v360_v7 = vpop.f32.mrf.mxu0  ;;  %v374_v8 = vpop.f32.mrf.mxu1 }
 0x19c   : > { %v410_v34 = vadd.f32 %v409_v13, %v360_v7  ;;  %v424_v35 = vadd.f32 %v423_v14, %v374_v8 }
 0x1a1   : > { %v411_v17 = vpop.f32.mrf.mxu2  ;;  %v425_v19 = vpop.f32.mrf.mxu3 }
 0x1a3   : > { %v362_v9 = vpop.f32.mrf.mxu0  ;;  %v376_v1 = vpop.f32.mrf.mxu1 }
 0x1a4   : > { %v412_v44 = vadd.f32 %v411_v17, %v362_v9  ;;  %v426_v46 = vadd.f32 %v425_v19, %v376_v1 }
 0x1ab   : > { %v506_v15 = vpop.f32.mrf.mxu0  ;;  %v520_v16 = vpop.f32.mrf.mxu1 }
 0x1ac   : > { %v525_v36 = vadd.f32 %v506_v15, %v410_v34  ;;  %v526_v37 = vadd.f32 %v520_v16, %v424_v35  ;;  %v1013_v15 = vpop.permute.xlu2 %1012 }
 0x1b3   : > { %v508_v21 = vpop.f32.mrf.mxu0  ;;  %v522_v22 = vpop.f32.mrf.mxu1 }
 0x1b4   : > { %v527_v18 = vadd.f32 %v508_v21, %v412_v44  ;;  %v528_v53 = vadd.f32 %v522_v22, %v426_v46 }
 0x1b9   : > { %v599_v23 = vpop.f32.mrf.mxu2  ;;  %v613_v60 = vpop.f32.mrf.mxu3 }
 0x1ba   : > { %v618_v38 = vadd.f32 %v599_v23, %v525_v36  ;;  %v619_v39 = vadd.f32 %v613_v60, %v526_v37 }
 0x1bb   : > { %v645_v24 = vpop.f32.mrf.mxu0  ;;  %v659_v20 = vpop.f32.mrf.mxu1 }
 0x1bc   : > { %v664_v47 = vadd.f32 %v645_v24, %v618_v38  ;;  %v665_v48 = vadd.f32 %v659_v20, %v619_v39  ;;  %v1916_v39 = vpop.permute.xlu1 %1915 }
 0x1c1   : > { %v601_v27 = vpop.f32.mrf.mxu2  ;;  %v615_v28 = vpop.f32.mrf.mxu3 }
 0x1c2   : > { %v620_v57 = vadd.f32 %v601_v27, %v527_v18  ;;  %v621_v58 = vadd.f32 %v615_v28, %v528_v53 }
 0x1c3   : > { %v647_v29 = vpop.f32.mrf.mxu0  ;;  %v661_v31 = vpop.f32.mrf.mxu1 }
 0x1c4   : > { %v666_v2 = vadd.f32 %v647_v29, %v620_v57  ;;  %v667_v3 = vadd.f32 %v661_v31, %v621_v58  ;;  %v1921_v57 = vpop.permute.xlu2 %1920 }
 0x1c9   : > { %v738_v50 = vpop.f32.mrf.mxu2  ;;  %v752_v51 = vpop.f32.mrf.mxu3 }
 0x1ca   : > { %v757_v54 = vadd.f32 %v738_v50, %v664_v47  ;;  %v758_v56 = vadd.f32 %v752_v51, %v665_v48 }
 0x1cb   : > { %v831_v32 = vpop.f32.mrf.mxu0  ;;  %v845_v33 = vpop.f32.mrf.mxu1 }
 0x1cc   : > { %v850_v63 = vadd.f32 %v831_v32, %v757_v54  ;;  %v851_v0 = vadd.f32 %v845_v33, %v758_v56  ;;  %v1018_v32 = vpop.permute.xlu0 %1017  ;;  %v1918_v56 = vunpack.i.h.bf16 %v1916_v39 }
 0x1d1   : > { %v740_v41 = vpop.f32.mrf.mxu2  ;;  %v754_v43 = vpop.f32.mrf.mxu3 }
 0x1d2   : > { %v759_v9 = vadd.f32 %v740_v41, %v666_v2  ;;  %v760_v1 = vadd.f32 %v754_v43, %v667_v3  ;;  %v1917_v41 = vunpack.i.l.bf16 %v1916_v39 }
 0x1d3   : > { %v833_v10 = vpop.f32.mrf.mxu0  ;;  %v847_v11 = vpop.f32.mrf.mxu1 }
 0x1d4   : > { %v852_v22 = vadd.f32 %v833_v10, %v759_v9  ;;  %v853_v23 = vadd.f32 %v847_v11, %v760_v1 }
 0x1d9   : > { %v892_v61 = vpop.f32.mrf.mxu2  ;;  %v906_v62 = vpop.f32.mrf.mxu3 }
 0x1da   : > { %v911_v4 = vadd.f32 %v892_v61, %v850_v63  ;;  %v912_v6 = vadd.f32 %v906_v62, %v851_v0  ;;  %v1922_v63 = vunpack.i.l.bf16 %v1921_v57  ;;  %v1175_v0 = vsel %vm445_vm9, %v1917_v41, %v1918_v56 }
 0x1de   : > { %v985_v7 = vpop.f32.mrf.mxu0  ;;  %v999_v8 = vpop.f32.mrf.mxu1 }
 0x1df   : > { %v1004_v13 = vadd.f32 %v985_v7, %v911_v4  ;;  %v1005_v14 = vadd.f32 %v999_v8, %v912_v6  ;;  %v1923_v4 = vunpack.i.h.bf16 %v1921_v57 }
 0x1e1   : > { %v1020_v16 = vadd.f32 %v1013_v15, %v1004_v13  ;;  %v1021_v17 = vadd.f32 %v1013_v15, %v1005_v14  ;;  %v894_v19 = vpop.f32.mrf.mxu2  ;;  %v908_v21 = vpop.f32.mrf.mxu3  ;;  %v1046_v8 = vsel %vm292_vm8, %v1922_v63, %v1923_v4 }
 0x1e2   : > { %v913_v27 = vadd.f32 %v894_v19, %v852_v22  ;;  %v914_v28 = vadd.f32 %v908_v21, %v853_v23  ;;  %v1926_v15 = vpop.permute.xlu1 %1925  ;;  %v1047_v19 = vsel %vm292_vm8, %v1923_v4, %v2050_v30  ;;  %v1176_v21 = vsel %vm445_vm9, %v1918_v56, %v2057_v42 }
 0x1e3   : > { %v1024_v60 = vmax.f32 %v1020_v16, 0.0  ;;  %v1025_v24 = vmax.f32 %v1021_v17, 0.0 }
 0x1e5   : > { %v2259_v20 = vpack.c.bf16 %v1025_v24, %v1024_v60 }
 0x1e6   : > { %v987_v29 = vpop.f32.mrf.mxu0  ;;  %v1001_v31 = vpop.f32.mrf.mxu1 }
 0x1e7   : > { %1030 = vst [vmem:[#allocation3 + $0x4] sm:$0xff] %v2259_v20  ;;  %v1006_v50 = vadd.f32 %v987_v29, %v913_v27  ;;  %v1007_v51 = vadd.f32 %v1001_v31, %v914_v28  ;;  %v1927_v28 = vunpack.i.l.bf16 %v1926_v15  ;;  %v1928_v31 = vunpack.i.h.bf16 %v1926_v15 }
 0x1e9   : > { %v1022_v33 = vadd.f32 %v1018_v32, %v1006_v50  ;;  %v1023_v34 = vadd.f32 %v1018_v32, %v1007_v51  ;;  %v1254_v30 = vsel %vm538_vm10, %v1927_v28, %v1928_v31 }
 0x1ea   : > { %v1936_v50 = vpop.permute.xlu1 %1935 }
 0x1eb   : > { %v1026_v35 = vmax.f32 %v1022_v33, 0.0  ;;  %v1027_v36 = vmax.f32 %v1023_v34, 0.0  ;;  %v1255_v34 = vsel %vm538_vm10, %v1928_v31, %v2060_v49  ;;  %v1937_v4 = vunpack.i.l.bf16 %v1936_v50 }
 0x1ed   : > { %v2262_v37 = vpack.c.bf16 %v1027_v36, %v1026_v35  ;;  %v1938_v35 = vunpack.i.h.bf16 %v1936_v50  ;;  %v1931_v36 = vpop.permute.xlu0 %1930 }
 0x1ee   : > { %v1161_v38 = vld [vmem:[#allocation3] sm:$0xff]  ;;  %v1795_v43 = vld [vmem:[#allocation3 + $0x8] sm:$0xf] }
 0x1ef   : > { %1031 = vst [vmem:[#allocation3 + $0x18] sm:$0xff] %v2262_v37  ;;  %v1845_v44 = vld [vmem:[#allocation3 + $0x4] sm:$0xf]  ;;  %v2265_v46 = vunpack.c.l.bf16 %v1161_v38  ;;  %v1166_v62 = vunpack.c.h.bf16 %v1161_v38  ;;  %v1162_v9 = vld [vmem:[#allocation3 + $0x8] sm:$0xff]  }
 0x1f0   : > { %v1167_v17 = vunpack.c.l.bf16 %v1162_v9 }
 0x1f1   : > { %v1180_v58 = vmul.f32 %v1917_v41, %v2265_v46  ;;  %v1181_v7 = vmul.f32 %v1175_v0, %v1166_v62  ;;  %v1052_v16 = vmul.f32 %v1166_v62, %v1046_v8  ;;  %v1260_v32 = vmul.f32 %v1254_v30, %v1166_v62 }
 0x1f2   : > { %v1182_v24 = vmul.f32 %v1176_v21, %v1167_v17  ;;  %v1053_v27 = vmul.f32 %v1167_v17, %v1047_v19  ;;  %v1051_v33 = vmul.f32 %v1922_v63, %v2265_v46  ;;  %v1452_v62 = vunpack.c.l.bf16 %v2259_v20 }
 0x1f6   : > { %v1847_v47 = vld [vmem:[#allocation3 + $0x18] sm:$0xf0]  ;;  %v1789_v48 = vld [vmem:[#allocation3 + $0x14] sm:$0xf0] }
 0x1f7   : > { %v1163_v10 = vld [vmem:[#allocation3 + $0x14] sm:$0xff]  ;;  %v1796_v11 = vor.u32 %v1847_v47, %v1795_v43  ;;  %v1792_v18 = vor.u32 %v1845_v44, %v1789_v48  ;;  %v1164_v6 = vld [vmem:[#allocation3 + $0x1c] sm:$0xff]   ;;  %v1261_v44 = vmul.f32 %v1255_v34, %v1167_v17  ;;  %v2296_v47 = vunpack.c.h.bf16 %v1162_v9 }
 0x1f8   : > { %v2267_v53 = vunpack.c.l.bf16 %v1163_v10  ;;  %v1169_v54 = vunpack.c.h.bf16 %v1163_v10  ;;  %v1170_v14 = vunpack.c.l.bf16 %v1164_v6  ;;  %v2292_v43 = vunpack.c.h.bf16 %v1164_v6  ;;  %v1823_v17 = vld [vmem:[#allocation3 + $0x18] sm:$0xf0] }
 0x1f9   : > { %1084 = vrot.lane.b32.xlu1 %v1796_v11, %s1961_s8  ;;  %1082 = vrot.lane.b32.xlu0 %v1792_v18, %s1961_s8  ;;  %v1384_v48 = vsel %vm578_vm11, %v1938_v35, %v2073_v5 }
 0x1fa   : > { %v1183_v61 = vmul.f32 %v1917_v41, %v2267_v53  ;;  %v1184_v3 = vmul.f32 %v1175_v0, %v1169_v54  ;;  %v1055_v13 = vmul.f32 %v1169_v54, %v1046_v8  ;;  %v1185_v23 = vmul.f32 %v1176_v21, %v1170_v14 }
 0x1fb   : > { %v1056_v60 = vmul.f32 %v1170_v14, %v1047_v19  ;;  %v1263_v51 = vmul.f32 %v1254_v30, %v1169_v54  ;;  %v1054_v42 = vmul.f32 %v1922_v63, %v2267_v53  ;;  %v1264_v41 = vmul.f32 %v1255_v34, %v1170_v14  ;;  %v2305_v54 = vpop.permute.xlu2 %1080  ;;  %v1850_v19 = vld [vmem:[#allocation3 + $0x8] sm:$0xf]  ;;  %v1852_v34 = vld [vmem:[#allocation3 + $0x1c] sm:$0xf0] }
 0x1fc   : > { %v1186_v2 = vpack.c.bf16 %v1183_v61, %v1180_v58  ;;  %v1187_v1 = vpack.c.bf16 %v1184_v3, %v1181_v7  ;;  %v1058_v22 = vpack.c.bf16 %v1055_v13, %v1052_v16  ;;  %v1188_v29 = vpack.c.bf16 %v1185_v23, %v1182_v24 }
 0x1fd   : > { %v1266_v38 = vpack.c.bf16 %v1263_v51, %v1260_v32  ;;  %v1057_v39 = vpack.c.bf16 %v1054_v42, %v1051_v33  ;;  %v1267_v10 = vpack.c.bf16 %v1264_v41, %v1261_v44  ;;  %v1393_v49 = vmul.f32 %v1384_v48, %v2292_v43  ;;  %v1665_v41 = vld [vmem:[%s2399_s4] sm:$0x7] }
 0x1fe   : > { %1199 = vrot.lane.b32.xlu2 %v1186_v2, %s1957_s25  ;;  %v1390_v11 = vmul.f32 %v1384_v48, %v2296_v47  ;;  %v1455_v58 = vunpack.c.l.bf16 %v2262_v37  ;;  %v1932_v61 = vunpack.i.l.bf16 %v1931_v36  ;;  %v1259_v2 = vmul.f32 %v1927_v28, %v2265_v46 }
 0x1ff   : > { %v1377_v8 = vunpack.c.h.bf16 %v2262_v37  ;;  %v1826_v21 = vor.u32 %v1850_v19, %v1823_v17 }
 0x200   : > { %v1396_v56 = vpack.c.bf16 %v1393_v49, %v1390_v11  ;;  %v1470_v0 = vmul.f32 %v1932_v61, %v1455_v58  ;;  %v1467_v3 = vmul.f32 %v1932_v61, %v1452_v62  ;;  %v1849_v49 = vld [vmem:[#allocation3 + $0x14] sm:$0xf0] }
 0x201   : > { %1194 = vrot.lane.b32.xlu1 %v2166_v40, %s1968_s30  ;;  %1201 = vrot.lane.b32.xlu0 %v1187_v1, %s1957_s25  ;;  %v1059_v40 = vpack.c.bf16 %v1056_v60, %v1053_v27  ;;  %v1383_v1 = vsel %vm578_vm11, %v1937_v4, %v1938_v35  ;;  %v1388_v60 = vmul.f32 %v1937_v4, %v1452_v62  ;;  %v1851_v35 = vld [vmem:[#allocation3 + $0x14] sm:$0xf0] }
 0x202   : > { %v1473_v7 = vpack.c.bf16 %v1470_v0, %v1467_v3  ;;  %v1392_v13 = vmul.f32 %v1383_v1, %v1377_v8 }
 0x203   : > { %v2317_v9 = vpop.permute.xlu2 %1065 }
 0x206   : > { %1125 = vrot.lane.b32.xlu2 %v1058_v22, %s1960_s28  ;;  %v1391_v22 = vmul.f32 %v1937_v4, %v1455_v58 }
 0x208   : > { %v1394_v27 = vpack.c.bf16 %v1391_v22, %v1388_v60 }
 0x209   : > { %1203 = vrot.lane.b32.xlu1 %v1188_v29, %s1957_s25  ;;  %1127 = vrot.lane.b32.xlu0 %v1059_v40, %s1960_s28  ;;  %s1970_s25 = smov 64  }
 0x20e   : > { %1273 = vrot.lane.b32.xlu2 %v2176_v45, %s1969_s16  ;;  %v1933_v45 = vunpack.i.h.bf16 %v1931_v36 }
 0x210   : > { %v1463_v18 = vsel %vm485_vm12, %v1933_v45, %v2091_v25  ;;  %v1262_v25 = vmul.f32 %v1927_v28, %v2267_v53  ;;  %v1462_v53 = vsel %vm485_vm12, %v1932_v61, %v1933_v45  ;;  %v1809_v61 = vld [vmem:[#allocation3 + $0x18] sm:$0xf0] }
 0x211   : > { %1280 = vrot.lane.b32.xlu1 %v1266_v38, %s1959_s27  ;;  %1123 = vrot.lane.b32.xlu0 %v1057_v39, %s1960_s28  ;;  %v1472_v57 = vmul.f32 %v1463_v18, %v2292_v43  ;;  %v1469_v5 = vmul.f32 %v1463_v18, %v2296_v47  ;;  %v1471_v46 = vmul.f32 %v1462_v53, %v1377_v8  ;;  %s1971_s28 = smov 32   ;;  %v1821_v38 = vld [vmem:[#allocation3 + $0x4] sm:$0xf] }
 0x212   : > { %v1265_v6 = vpack.c.bf16 %v1262_v25, %v1259_v2  ;;  %v1822_v39 = vor.u32 %v1851_v35, %v1821_v38 }
 0x213   : > { %v1475_v63 = vpack.c.bf16 %v1472_v57, %v1469_v5 }
 0x216   : > { %1282 = vrot.lane.b32.xlu2 %v1267_v10, %s1959_s27 }
 0x219   : > { %1411 = vrot.lane.b32.xlu1 %v1396_v56, %s1956_s24  ;;  %1326 = vrot.lane.b32.xlu0 %v2184_v12, %s1970_s25  ;;  %v1374_v12 = vunpack.c.h.bf16 %v2259_v20  ;;  %v1941_v20 = vpop.permute.xlu2 %1940  ;;  %v1807_v56 = vld [vmem:[#allocation3 + $0x4] sm:$0xf] }
 0x21a   : > { %v1942_v23 = vunpack.i.l.bf16 %v1941_v20  ;;  %v1943_v24 = vunpack.i.h.bf16 %v1941_v20 }
 0x21b   : > { %v1389_v14 = vmul.f32 %v1383_v1, %v1374_v12  ;;  %v1468_v15 = vmul.f32 %v1462_v53, %v1374_v12 }
 0x21c   : > { %v1611_v28 = vmul.f32 %v1942_v23, %v1452_v62  ;;  %v1607_v29 = vsel %vm388_vm13, %v1943_v24, %v2124_v59  ;;  %v1606_v40 = vsel %vm388_vm13, %v1942_v23, %v1943_v24  ;;  %v1534_v59 = vld.sshfl [vmem:[#allocation1] sm:$0xff pattern:$0x73625140] }
 0x21d   : > { %v1395_v37 = vpack.c.bf16 %v1392_v13, %v1389_v14  ;;  %v1474_v16 = vpack.c.bf16 %v1471_v46, %v1468_v15  ;;  %v1615_v30 = vmul.f32 %v1606_v40, %v1377_v8  ;;  %v1616_v50 = vmul.f32 %v1607_v29, %v2292_v43 }
 0x21e   : > { %1490 = vrot.lane.b32.xlu2 %v1475_v63, %s1958_s26  ;;  %v1612_v51 = vmul.f32 %v1606_v40, %v1374_v12  ;;  %v1613_v42 = vmul.f32 %v1607_v29, %v2296_v47  ;;  %v1848_v63 = vld [vmem:[#allocation3 + $0x8] sm:$0xf] }
 0x21f   : > { %v1812_v2 = vor.u32 %v1848_v63, %v1809_v61 }
 0x220   : > { %v1618_v32 = vpack.c.bf16 %v1615_v30, %v1612_v51  ;;  %v1619_v33 = vpack.c.bf16 %v1616_v50, %v1613_v42 }
 0x221   : > { %1278 = vrot.lane.b32.xlu1 %v1265_v6, %s1959_s27  ;;  %1486 = vrot.lane.b32.xlu0 %v1473_v7, %s1958_s26  ;;  %s1972_s27 = smov 48  }
 0x226   : > { %1481 = vrot.lane.b32.xlu2 %v2198_v55, %s1971_s28  ;;  %v1614_v55 = vmul.f32 %v1942_v23, %v1455_v58  ;;  %v1808_v58 = vor.u32 %v1849_v49, %v1807_v56 }
 0x228   : > { %v1617_v31 = vpack.c.bf16 %v1614_v55, %v1611_v28  ;;  %v1620_v28 = vld [vmem:[%s2398_s3 + $0x2] sm:$0x3] }
 0x229   : > { %1409 = vrot.lane.b32.xlu0 %v1395_v37, %s1956_s24  ;;  %1488 = vrot.lane.b32.xlu1 %v1474_v16, %s1958_s26 }
 0x22e   : > { %1553 = vrot.lane.b32.xlu2 %v1826_v21, %s1963_s14 }
 0x231   : > { %1407 = vrot.lane.b32.xlu0 %v1394_v27, %s1956_s24  ;;  %1402 = vrot.lane.b32.xlu1 %v2191_v52, %s1972_s27  ;;  %v1829_v52 = vld [vmem:[#allocation3 + $0xc] sm:$0xf] }
 0x232   : > { %v1830_v36 = vor.u32 %v1852_v34, %v1829_v52 }
 0x236   : > { %1624 = vrot.lane.b32.xlu2 %v1617_v31, %s1955_s23 }
 0x239   : > { %1626 = vrot.lane.b32.xlu0 %v1618_v32, %s1955_s23  ;;  %1628 = vrot.lane.b32.xlu1 %v1619_v33, %s1955_s23 }
 0x23e   : > { %1536 = vrot.lane.b32.xlu2 %v1534_v59, %s1961_s8 }
 0x241   : > { %1555 = vrot.lane.b32.xlu0 %v1830_v36, %s1963_s14  ;;  %1551 = vrot.lane.b32.xlu1 %v1822_v39, %s1963_s14 }
 0x249   : > { %1668 = vperm.xlu0 %1913, %v1665_v41  }
 0x258   : > { %v1200_v43 = vpop.permute.xlu2 %1199 }
 0x260   : > { %v1126_v10 = vpop.permute.xlu2 %1125 }
 0x26b   : > { %v1085_v44 = vpop.permute.xlu1 %1084  ;;  %v1083_v47 = vpop.permute.xlu0 %1082 }
 0x26c   : > { %v1086_v45 = vsel %vm338_vm15, %v2305_v54, %v1083_v47  ;;  %v1087_v48 = vsel %vm338_vm15, %v1083_v47, %v1085_v44  ;;  %v1274_v54 = vpop.permute.xlu2 %1273 }
 0x26d   : > { %1101 = vmatpush.bf16.msra.mxu2 %v1086_v45  ;;  %1114 = vmatpush.bf16.msra.mxu3 %v1087_v48 }
 0x270   : > { %1797 = vmatmul.msk.bf16.vlgmr.msra.gmra.mxu2 %vm338_vm15, %v2317_v9  ;;  %1798 = vmatmul.msk.bf16.vlgmr.msra.gmra.mxu3 %vm338_vm15, %v2317_v9 }
 0x273   : > { %v1195_v11 = vpop.permute.xlu1 %1194  ;;  %v1202_v18 = vpop.permute.xlu0 %1201 }
 0x274   : > { %v1205_v57 = vsel %vm485_vm12, %v1200_v43, %v1202_v18  ;;  %v1283_v3 = vpop.permute.xlu2 %1282 }
 0x275   : > { %1219 = vmatpush.bf16.msrb.mxu2 %v1205_v57 }
 0x279   : > { %1348 = vmatpush.bf16.msra.mxu2 %v1808_v58 }
 0x27b   : > { %v1204_v5 = vpop.permute.xlu1 %1203  ;;  %v1128_v62 = vpop.permute.xlu0 %1127 }
 0x27c   : > { %v1206_v25 = vsel %vm485_vm12, %v1202_v18, %v1204_v5  ;;  %v1130_v0 = vsel %vm388_vm13, %v1126_v10, %v1128_v62  ;;  %v1491_v53 = vpop.permute.xlu2 %1490 }
 0x27d   : > { %1155 = vmatpush.bf16.msrb.mxu1 %v1130_v0  ;;  %1232 = vmatpush.bf16.msrb.mxu3 %v1206_v25 }
 0x280   : > { %1800 = vmatmul.msk.bf16.vlgmr.msrb.gmra.mxu1 %vm338_vm15, %v2142_v26  ;;  %1801 = vmatmul.msk.bf16.vlgmr.msrb.gmra.mxu2 %vm338_vm15, %v1195_v11 }
 0x281   : > { %1361 = vmatpush.bf16.msra.mxu3 %v1812_v2 }
 0x282   : > { %1802 = vmatmul.msk.bf16.vlgmr.msrb.gmra.mxu3 %vm338_vm15, %v1195_v11 }
 0x283   : > { %v1281_v4 = vpop.permute.xlu1 %1280  ;;  %v1124_v6 = vpop.permute.xlu0 %1123 }
 0x284   : > { %v1285_v7 = vsel %vm578_vm11, %v1281_v4, %v1283_v3  ;;  %v1129_v8 = vsel %vm388_vm13, %v1124_v6, %v1126_v10  ;;  %v1482_v14 = vpop.permute.xlu2 %1481 }
 0x285   : > { %1142 = vmatpush.bf16.msrb.mxu0 %v1129_v8  ;;  %1311 = vmatpush.bf16.msra.mxu1 %v1285_v7 }
 0x288   : > { %1799 = vmatmul.msk.bf16.vlgmr.msrb.gmra.mxu0 %vm338_vm15, %v2142_v26 }
 0x28b   : > { %v1412_v9 = vpop.permute.xlu1 %1411  ;;  %v1327_v12 = vpop.permute.xlu0 %1326 }
 0x28c   : > { %v1554_v19 = vpop.permute.xlu2 %1553 }
 0x290   : > { %1804 = vmatmul.msk.bf16.vlgmr.msra.gmra.mxu1 %vm338_vm15, %v1274_v54  ;;  %1813 = vmatmul.msk.bf16.vlgmr.msra.gmra.mxu2 %vm338_vm15, %v1327_v12 }
 0x292   : > { %1814 = vmatmul.msk.bf16.vlgmr.msra.gmra.mxu3 %vm338_vm15, %v1327_v12 }
 0x293   : > { %v1279_v1 = vpop.permute.xlu1 %1278  ;;  %v1487_v13 = vpop.permute.xlu0 %1486 }
 0x294   : > { %v1284_v46 = vsel %vm578_vm11, %v1279_v1, %v1281_v4  ;;  %v1625_v23 = vpop.permute.xlu2 %1624 }
 0x295   : > { %1298 = vmatpush.bf16.msra.mxu0 %v1284_v46 }
 0x298   : > { %1803 = vmatmul.msk.bf16.vlgmr.msra.gmra.mxu0 %vm338_vm15, %v1274_v54 }
 0x29b   : > { %v1410_v15 = vpop.permute.xlu0 %1409  ;;  %v1489_v37 = vpop.permute.xlu1 %1488 }
 0x29c   : > { %v1414_v26 = vsel %vm538_vm10, %v1410_v15, %v1412_v9  ;;  %v1492_v16 = vsel %vm445_vm9, %v1487_v13, %v1489_v37  ;;  %v1493_v17 = vsel %vm445_vm9, %v1489_v37, %v1491_v53  ;;  %v1537_v50 = vpop.permute.xlu2 %1536 }
 0x29d   : > { %1440 = vmatpush.bf16.msrb.mxu1 %v1414_v26  ;;  %1506 = vmatpush.bf16.msrb.mxu2 %v1492_v16 }
 0x29e   : > { %1519 = vmatpush.bf16.msrb.mxu3 %v1493_v17 }
 0x2a0   : > { %1817 = vmatmul.msk.bf16.vlgmr.msrb.gmra.mxu2 %vm338_vm15, %v1482_v14 }
 0x2a2   : > { %1818 = vmatmul.msk.bf16.vlgmr.msrb.gmra.mxu3 %vm338_vm15, %v1482_v14 }
 0x2a3   : > { %v1408_v20 = vpop.permute.xlu0 %1407  ;;  %v1403_v21 = vpop.permute.xlu1 %1402 }
 0x2a4   : > { %v1413_v22 = vsel %vm538_vm10, %v1408_v20, %v1410_v15  ;;  %1816 = vmatmul.msk.bf16.vlgmr.msrb.gmra.mxu1 %vm338_vm15, %v1403_v21 }
 0x2a5   : > { %1427 = vmatpush.bf16.msrb.mxu0 %v1413_v22 }
 0x2a8   : > { %1815 = vmatmul.msk.bf16.vlgmr.msrb.gmra.mxu0 %vm338_vm15, %v1403_v21 }
 0x2ab   : > { %v1627_v60 = vpop.permute.xlu0 %1626  ;;  %v1629_v24 = vpop.permute.xlu1 %1628 }
 0x2ac   : > { %v1630_v27 = vsel %vm292_vm8, %v1625_v23, %v1627_v60  ;;  %v1631_v55 = vsel %vm292_vm8, %v1627_v60, %v1629_v24 }
 0x2ad   : > { %1644 = vmatpush.bf16.msra.mxu2 %v1630_v27  ;;  %1657 = vmatpush.bf16.msra.mxu3 %v1631_v55 }
 0x2b0   : > { %1833 = vmatmul.msk.bf16.vlgmr.msra.gmra.mxu2 %vm338_vm15, %v1620_v28 }
 0x2b2   : > { %1834 = vmatmul.msk.bf16.vlgmr.msra.gmra.mxu3 %vm338_vm15, %v1620_v28 }
 0x2b3   : > { %v1556_v29 = vpop.permute.xlu0 %1555  ;;  %v1552_v40 = vpop.permute.xlu1 %1551 }
 0x2b4   : > { %v1558_v31 = vsel %vm871_vm0, %v1554_v19, %v1556_v29  ;;  %v1557_v30 = vsel %vm871_vm0, %v1552_v40, %v1554_v19 }
 0x2b5   : > { %1571 = vmatpush.bf16.msra.mxu0 %v1557_v30  ;;  %1584 = vmatpush.bf16.msra.mxu1 %v1558_v31 }
 0x2b8   : > { %1831 = vmatmul.msk.bf16.vlgmr.msra.gmra.mxu0 %vm338_vm15, %v1537_v50  ;;  %1832 = vmatmul.msk.bf16.vlgmr.msra.gmra.mxu1 %vm338_vm15, %v1537_v50 }
 0x2bb   : > { %v1669_v17 = vpop.permute.xlu0 %1668 }
 0x2f3   : > { %v1103_v51 = vpop.f32.mrf.mxu2  ;;  %v1116_v42 = vpop.f32.mrf.mxu3 }
 0x2fb   : > { %v1105_v32 = vpop.f32.mrf.mxu2  ;;  %v1118_v33 = vpop.f32.mrf.mxu3 }
 0x2fd   : > { %v1157_v52 = vpop.f32.mrf.mxu1 }
 0x2fe   : > { %v1158_v61 = vadd.f32 %v1157_v52, %v1116_v42 }
 0x303   : > { %v1221_v34 = vpop.f32.mrf.mxu2 }
 0x305   : > { %v1234_v59 = vpop.f32.mrf.mxu3  ;;  %v1144_v35 = vpop.f32.mrf.mxu0 }
 0x306   : > { %v1159_v36 = vpop.f32.mrf.mxu1  ;;  %v1145_v57 = vadd.f32 %v1144_v35, %v1103_v51  ;;  %v1239_v63 = vadd.f32 %v1234_v59, %v1158_v61 }
 0x308   : > { %v1238_v5 = vadd.f32 %v1221_v34, %v1145_v57 }
 0x30b   : > { %v1223_v38 = vpop.f32.mrf.mxu2 }
 0x30d   : > { %v1236_v39 = vpop.f32.mrf.mxu3  ;;  %v1146_v41 = vpop.f32.mrf.mxu0 }
 0x30e   : > { %v1313_v43 = vpop.f32.mrf.mxu1 }
 0x30f   : > { %v1318_v2 = vadd.f32 %v1313_v43, %v1239_v63 }
 0x313   : > { %v1350_v44 = vpop.f32.mrf.mxu2 }
 0x315   : > { %v1363_v47 = vpop.f32.mrf.mxu3  ;;  %v1300_v45 = vpop.f32.mrf.mxu0 }
 0x316   : > { %v1315_v48 = vpop.f32.mrf.mxu1  ;;  %v1317_v25 = vadd.f32 %v1300_v45, %v1238_v5  ;;  %v1368_v6 = vadd.f32 %v1363_v47, %v1318_v2 }
 0x318   : > { %v1367_v7 = vadd.f32 %v1350_v44, %v1317_v25 }
 0x31b   : > { %v1352_v10 = vpop.f32.mrf.mxu2 }
 0x31d   : > { %v1365_v49 = vpop.f32.mrf.mxu3  ;;  %v1302_v11 = vpop.f32.mrf.mxu0 }
 0x321   : > { %v1442_v18 = vpop.f32.mrf.mxu1 }
 0x322   : > { %v1447_v8 = vadd.f32 %v1442_v18, %v1368_v6 }
 0x323   : > { %v1508_v56 = vpop.f32.mrf.mxu2 }
 0x325   : > { %v1521_v58 = vpop.f32.mrf.mxu3  ;;  %v1429_v54 = vpop.f32.mrf.mxu0 }
 0x326   : > { %v1446_v9 = vadd.f32 %v1429_v54, %v1367_v7  ;;  %v1526_v53 = vadd.f32 %v1521_v58, %v1447_v8 }
 0x328   : > { %v1525_v1 = vadd.f32 %v1508_v56, %v1446_v9 }
 0x329   : > { %v1444_v62 = vpop.f32.mrf.mxu1 }
 0x32b   : > { %v1510_v0 = vpop.f32.mrf.mxu2 }
 0x32d   : > { %v1523_v3 = vpop.f32.mrf.mxu3  ;;  %v1431_v4 = vpop.f32.mrf.mxu0 }
 0x333   : > { %v1646_v12 = vpop.f32.mrf.mxu2 }
 0x335   : > { %v1659_v13 = vpop.f32.mrf.mxu3  ;;  %v1573_v46 = vpop.f32.mrf.mxu0 }
 0x336   : > { %v1586_v14 = vpop.f32.mrf.mxu1  ;;  %v1590_v15 = vadd.f32 %v1573_v46, %v1525_v1 }
 0x337   : > { %v1591_v37 = vadd.f32 %v1586_v14, %v1526_v53 }
 0x338   : > { %v1663_v26 = vadd.f32 %v1646_v12, %v1590_v15 }
 0x339   : > { %v1664_v16 = vadd.f32 %v1659_v13, %v1591_v37 }
 0x33a   : > { %v1671_v21 = vadd.f32 %v1669_v17, %v1663_v26 }
 0x33b   : > { %v1672_v19 = vadd.f32 %v1669_v17, %v1664_v16  ;;  %v1648_v20 = vpop.f32.mrf.mxu2 }
 0x33d   : > { %v1675_v22 = vrot.slane %v1672_v19, 4  ;;  %v1661_v23 = vpop.f32.mrf.mxu3  ;;  %v1575_v60 = vpop.f32.mrf.mxu0 }
 0x33e   : > { %v1588_v24 = vpop.f32.mrf.mxu1 }
 0x33f   : > { %v1676_v27 = vsel %vm284_vm4, %v1671_v21, %v1675_v22 }
 0x340   : > { %1678 = vst [vmem:[%s224_s20] sm:$0x77] %v1676_v27 }
 0x341 PF: > { %s15_s18 = sadd.s32 1, %s1950_s18  }
 0x342   : > { %p12_p4 = scmp.ge.s32.totalorder %s15_s18, 4  }
 0x344   :  { %14 = sbr.rel (!%p12_p4) target bundleno = 1 (0x1), region = 76 }

</bundles_post_ra>
